<compile_context>
chip_gen: v7x
topology: tpu7x:2x2x1
jax: 0.10.0
libtpu: 0.0.40
codegen_flags: <defaults>
</compile_context>

<pallas_src>
import math
import functools

import jax
import jax.numpy as jnp
from jax.experimental import pallas as pl
from jax.experimental.pallas import tpu as pltpu


_LANE = 128
_MAX_WIDTH = 8 * _LANE                      # up to 1024-wide lane-dense rows
_TARGET_BLOCK_BYTES = 8 * 1024 * 1024       # ~8 MiB per block (perf review)
_SMALL_BYTES = 256 * 1024                   # below this, plain XLA wins

_TRANSCENDENTAL = {"tanh", "gelu", "gelu_orig", "gelu_new", "silu", "swish"}


def _apply_activation(x, activation_type: str):
    """Elementwise activation math, mirrors PyTorch semantics exactly."""
    a = activation_type.lower()
    if a == "relu":
        return jnp.maximum(x, 0.0)
    elif a == "tanh":
        return jnp.tanh(x)
    elif a in ("gelu", "gelu_orig"):
        # PyTorch nn.functional.gelu default: exact (erf-based) GELU.
        return 0.5 * x * (1.0 + jax.lax.erf(x * (1.0 / math.sqrt(2.0))))
    elif a in ("silu", "swish"):
        return x * jax.nn.sigmoid(x)
    elif a == "gelu_new":
        c = math.sqrt(2.0 / math.pi)
        return 0.5 * x * (1.0 + jnp.tanh(c * (x + 0.044715 * x * x * x)))
    elif a == "leakyrelu":
        # PyTorch default negative_slope = 0.01
        return jnp.where(x >= 0.0, x, 0.01 * x)
    else:
        # TODO(synk): the PyTorch module falls back to transformers'
        # get_activation() for unknown names; not replicated here.
        raise ValueError(f"unsupported activation_type: {activation_type}")


def _activation_kernel(x_ref, o_ref, *, activation_type: str):
    o_ref[...] = _apply_activation(x_ref[...], activation_type).astype(o_ref.dtype)


def _choose_width(n: int) -> int:
    """Largest lane-dense row width (multiple of 128, <= 1024) dividing n."""
    assert n % _LANE == 0
    m = n // _LANE
    for k in range(_MAX_WIDTH // _LANE, 0, -1):
        if m % k == 0:
            return k * _LANE
    return _LANE


def _divisors(n: int):
    ds = []
    i = 1
    while i * i <= n:
        if n % i == 0:
            ds.append(i)
            if i != n // i:
                ds.append(n // i)
        i += 1
    return ds


def _vmem_capacity_bytes() -> int:
    try:
        cap = getattr(pltpu.get_tpu_info(), "vmem_capacity_bytes", None)
        if cap:
            return int(cap)
    except Exception:
        pass
    return 64 * 1024 * 1024   # conservative default: v7x per-core VMEM


def _pick_block_rows(rows: int, row_bytes: int, sub: int,
                     target_block_bytes: int) -> int:
    """Sublane-aligned block_rows near the byte target.

    Prefers an exact divisor of `rows` (every grid step full-size, unmasked
    vst) that still leaves >= 2 grid steps so both v7x TensorCores get work.
    """
    target = max(sub, (target_block_bytes // row_bytes) // sub * sub)
    cands = [d for d in _divisors(rows)
             if d % sub == 0 and d <= target and rows // d >= 2]
    if cands:
        return max(cands)
    if rows > target:
        # No clean divisor near the target: only the last of many grid steps
        # is a (correct) masked partial block.
        return target
    # Small row counts: 2-way sublane-aligned split so the grid still has 2
    # steps (megacore); the second block may be partial.
    half = ((rows + 1) // 2 + sub - 1) // sub * sub
    if sub <= half < rows:
        return half
    return rows   # single full block (== full array dim, always legal)


def _run_lane_dense(flat, activation_type: str):
    """Run the kernel on a 1-D array whose length is a multiple of 128."""
    n = flat.shape[0]
    itemsize = jnp.dtype(flat.dtype).itemsize
    width = _choose_width(n)
    rows = n // width
    # Sublane packing multiple: 8 for 4-byte, 16 for 2-byte, 32 for 1-byte.
    sub = max(8, 32 // itemsize)

    vmem_cap = _vmem_capacity_bytes()
    target_block_bytes = min(_TARGET_BLOCK_BYTES, vmem_cap // 8)
    block_rows = _pick_block_rows(rows, width * itemsize, sub, target_block_bytes)
    grid = (pl.cdiv(rows, block_rows),)
    block_bytes = block_rows * width * itemsize

    # In + out blocks, each double-buffered (input_output_aliases does NOT
    # save in-kernel VMEM) -> budget ~6x block with a 32 MiB floor, capped at
    # ~3/4 of physical VMEM (64 MiB on v7x, 128 MiB on v5e/v6e).
    vmem_limit = int(min(vmem_cap * 3 // 4,
                         max(32 * 1024 * 1024, 6 * block_bytes)))

    cost = pl.CostEstimate(
        flops=4 * n,
        transcendentals=n if activation_type.lower() in _TRANSCENDENTAL else 0,
        bytes_accessed=2 * n * itemsize,
    )

    x2d = flat.reshape(rows, width)
    kernel = functools.partial(_activation_kernel, activation_type=activation_type)
    out2d = pl.pallas_call(
        kernel,
        out_shape=jax.ShapeDtypeStruct((rows, width), flat.dtype),
        grid_spec=pltpu.PrefetchScalarGridSpec(
            num_scalar_prefetch=0,
            grid=grid,
            in_specs=[pl.BlockSpec((block_rows, width), lambda i: (i, 0))],
            out_specs=pl.BlockSpec((block_rows, width), lambda i: (i, 0)),
        ),
        # Zero-copy HBM reuse only when the caller donates the input.
        input_output_aliases={0: 0},
        cost_estimate=cost,
        compiler_params=pltpu.CompilerParams(
            dimension_semantics=("parallel",),
            vmem_limit_bytes=vmem_limit,
        ),
    )(x2d)
    return out2d.reshape(-1)


def activations_forward(x, activation_type: str):
    """Pallas equivalent of Activations(activation_type)(x)."""
    orig_shape = x.shape
    n = x.size
    if n == 0:
        return x
    itemsize = jnp.dtype(x.dtype).itemsize

    # Tiny tensors: pallas_call launch/pipeline overhead dominates and a grid
    # of 1 would waste a v7x TensorCore -> plain fused XLA elementwise.
    if n * itemsize < _SMALL_BYTES:
        return _apply_activation(x, activation_type).astype(x.dtype)

    flat = x.reshape(-1)
    n_main = (n // _LANE) * _LANE
    if n_main == n:
        out_flat = _run_lane_dense(flat, activation_type)
    else:
        # Ragged case: kernel on the largest 128-multiple prefix, plain jnp on
        # the <128-element tail (avoids a full-tensor pad + slice pass).
        # TODO(synk): fold the tail into the kernel with a masked pltpu.store.
        main = _run_lane_dense(flat[:n_main], activation_type)
        tail = _apply_activation(flat[n_main:], activation_type).astype(x.dtype)
        out_flat = jnp.concatenate([main, tail])
    return out_flat.reshape(orig_shape)


if __name__ == "__main__":
    key = jax.random.PRNGKey(0)

    ref_fns = {
        "relu": lambda v: jnp.maximum(v, 0.0),
        "tanh": jnp.tanh,
        "gelu": lambda v: jax.nn.gelu(v, approximate=False),
        "silu": jax.nn.silu,
        "swish": lambda v: v * jax.nn.sigmoid(v),
        "gelu_new": lambda v: jax.nn.gelu(v, approximate=True),
        "gelu_orig": lambda v: jax.nn.gelu(v, approximate=False),
        "leakyrelu": lambda v: jnp.where(v >= 0.0, v, 0.01 * v),
    }

    shapes = [
        (2, 8, 32),       # tiny -> plain-XLA short-circuit
        (3, 5, 7),        # tiny, non-128-multiple -> short-circuit
        (2, 128, 3072),   # lane-dense kernel path, grid split across 2 cores
        (517, 1031),      # kernel path with a ragged 35-element tail
    ]
    keys = jax.random.split(key, len(shapes))
    for shape, k in zip(shapes, keys):
        x = jax.random.normal(k, shape, dtype=jnp.float32)
        for act, ref_fn in ref_fns.items():
            out = jax.block_until_ready(activations_forward(x, act))
            ref = ref_fn(x)
            assert out.shape == x.shape and out.dtype == x.dtype
            assert jnp.allclose(out, ref, atol=1e-5, rtol=1e-5), (
                f"mismatch for {act} at shape {shape}"
            )

    print("KERNEL_OK")
</pallas_src>

<mosaic_0001>
module attributes {stable_mosaic.version = 11 : i64} {
  func.func @_activation_kernel(%arg0: i32, %arg1: memref<384x1024xf32, #tpu.memory_space<vmem>>, %arg2: memref<384x1024xf32, #tpu.memory_space<vmem>>) attributes {dimension_semantics = [#tpu.dimension_semantics<parallel>], iteration_bounds = array<i64: 2>, scalar_prefetch = 0 : i64, scratch_operands = 0 : i64, tpu.core_type = #tpu.core_type<tc>, window_params = [{transform_indices = @transform_0, window_bounds = array<i64: 384, 1024>}, {transform_indices = @transform_1, window_bounds = array<i64: 384, 1024>}]} {
    %c0 = arith.constant 0 : index
    %c0_0 = arith.constant 0 : index
    %0 = vector.load %arg1[%c0, %c0_0] : memref<384x1024xf32, #tpu.memory_space<vmem>>, vector<384x1024xf32>
    %cst = arith.constant 0.000000e+00 : f32
    %1 = vector.broadcast %cst : f32 to vector<384x1024xf32>
    %2 = arith.maximumf %0, %1 : vector<384x1024xf32>
    %c0_1 = arith.constant 0 : index
    %c0_2 = arith.constant 0 : index
    %3 = vector.load %arg2[%c0_1, %c0_2] : memref<384x1024xf32, #tpu.memory_space<vmem>>, vector<384x1024xf32>
    tpu.vector_store %arg2[%c0_1, %c0_2], %2 {strides = array<i32>} : memref<384x1024xf32, #tpu.memory_space<vmem>>, vector<384x1024xf32>,
    return
  }
  func.func @transform_0(%arg0: i32) -> (i32, i32) {
    %c0_i32 = arith.constant 0 : i32
    %c0_i32_0 = arith.constant 0 : i32
    return %arg0, %c0_i32 : i32, i32
  }
  func.func @transform_1(%arg0: i32) -> (i32, i32) {
    %c0_i32 = arith.constant 0 : i32
    %c0_i32_0 = arith.constant 0 : i32
    return %arg0, %c0_i32 : i32, i32
  }
}

</mosaic_0001>

<bundles_post_ra>
// kernel: tpu_custom_call.1
= control target key start
LH: loop header
LB: loop body
LE: loop exit
PB: predicated region body
PF: predicated region fallthrough
CT: control target
= control target key end

     0   :  { %6 = vsyncpa [#allocation3], 0  ;;  %s2491_s0 = inlined_call_operand.hbm [shape: f32[768,1024], index: 0, kind: input, shape index: {}, may-alias: {0,1}]   ;;  %s2492_s1 = inlined_call_operand.hbm [shape: f32[768,1024], index: 1, kind: output, shape index: {}, may-alias: {0,1}]  }
   0x1   :  { %8 = vsyncpa [#allocation3 + $0x1], 0 }
   0x2   :  { %9 = vsyncpa [#allocation4], 0 }
   0x3   :  { %11 = vsyncpa [#allocation4 + $0x1], 0  ;;  %s1560_s6 = smov 0   ;;  %s1562_s7 = smov 0  }
   0x4   :  { %s1564_s8 = smov 0   ;;  %s1566_s9 = smov 0  }
   0x5 LB: > { %s1581_s10 = sadd.s32 4294967295, %s1542_s9   ;;  %s1378_s11 = sadd.s32 4294967294, %s1542_s9   ;;  %s1542_s9 = sphi %s1566_s9, %s2504_s9   ;;  %s1538_s8 = sphi %s1564_s8, %s2503_s8   ;;  %s1534_s7 = sphi %s1562_s7, %s2502_s7   ;;  %s1530_s6 = sphi %s1560_s6, %s2501_s6  }
   0x6   : > { %s1585_s12 = sadd.s32 1, %s1542_s9   ;;  %s24_s13 = sadd.s32 1, %s1538_s8 }
   0x7   : > { %s21_s14 = ssub.s32 %s1542_s9, %s1585_s12  ;;  %p31_p0 = scmp.ne.s32.totalorder %s1538_s8, %s1534_s7 }
   0x8   : > { %p22_p1 = scmp.eq.s32.totalorder %s21_s14, 0  ;;  %p32_p2 = scmp.eq.s32.totalorder %s1542_s9, 0 }
   0x9   : > { %p37_p3 = scmp.ne.s32.totalorder %s1534_s7, %s1530_s6  ;;  %p38_p4 = scmp.eq.s32.totalorder %s1581_s10, 0 }
   0xa   : > { %s1597_s15 = scalar_select %p22_p1, %s1538_s8, %s24_s13  }
   0xb   : > { %p33_p5 = por %p32_p2, %p31_p0  ;;  %p1599_p6 = por %p38_p4, %p37_p3 }
   0xc   : > { %p61_p7 = scmp.eq.s32.totalorder %s1581_s10, 1  ;;  %p67_p8 = scmp.eq.s32.totalorder %s1378_s11, 1 }
   0xd   : > { %p1408_p10 = scmp.lt.s32.totalorder %s1542_s9, 2  ;;  %s87_s19 = sand.u32 1, %s1538_s8  }
   0xe   : > { %p1606_p11 = por %p61_p7, %p31_p0  ;;  %p1610_p12 = por %p67_p8, %p37_p3 }
   0xf   : > { %s1392_s20 = smul.u32 49152, %s1542_s9  ;;  %p1621_p13 = pnand %p1408_p10, %p33_p5 }
  0x10   : > { %s2495_s17 = scalar_select %p1606_p11, 1, 0 }
  0x11   : > { %s2496_s18 = scalar_select %p1610_p12, 1, 0 }
  0x12   : > { %s1394_s21 = smul.u32 3072, %s87_s19  ;;  %s1619_s24 = scalar_lea.hbm %s2491_s0, %s1392_s20 }
  0x13   : > { %s1627_s28 = scalar_lea.sflag [#allocation3], %s87_s19  ;;  %s1446_s29 = scalar_lea.hbm %s1619_s24, 49152 }
  0x14   : > { %s91_s26 = scalar_lea.vmem [#allocation2], %s1394_s21  ;;  %p1447_p0 = scmp.ne.s32.totalorder %s1619_s24, %s1446_s29 }
  0x15   : > { %s99_s27 = sshll.u32 %s91_s26, 4  ;;  %p1448_p1 = pneg %p1621_p13  ;;  %s1625_s27 = int_to_ptr.vmem [resolvable:$true] %s99_s27 }
  0x16   : > { %s1451_s3 = scalar_lea.hbm %s2491_s0, 98304  ;;  %p1452_p4 = scmp.lt.u32.totalorder %s1619_s24, %s2491_s0 }
  0x17   : > { %p1449_p2 = pnand %p1448_p1, %p1447_p0  ;;  %p1453_p5 = scmp.lt.u32.totalorder %s1451_s3, %s1446_s29 }
  0x18   : > { %p1455_p8 = scmp.lt.u32.totalorder %s1446_s29, %s1619_s24 }
  0x19   : > { %p1450_p3 = pneg %p1449_p2  ;;  %p1454_p7 = por %p1453_p5, %p1452_p4 }
  0x1b   : > { %p1456_p10 = por %p1455_p8, %p1454_p7 }
  0x1d   : > { %p1457_p9 = pnand %p1456_p10, %p1450_p3 }
  0x1f   : > { %1460 = shalt.err (!%p1457_p9)
}
  0x20   : > { %s1461_s11 = scalar_lea.vmem %s1625_s27, 49152  ;;  %s1544_s13 = smov [#allocation2]  }
  0x21   : > { %p1462_p0 = scmp.ne.s32.totalorder %s1625_s27, %s1461_s11  ;;  %s1466_s14 = sshll.u32 %s1544_s13, 4  ;;  %s1467_s14 = int_to_ptr.vmem [resolvable:$false] %s1466_s14 }
  0x22   : > { %s1468_s19 = scalar_lea.vmem %s1467_s14, 98304  ;;  %p1469_p11 = scmp.lt.s32.totalorder %s1625_s27, %s1467_s14 }
  0x23   : > { %p1464_p2 = pnand %p1462_p0, %p1448_p1  ;;  %p1470_p4 = scmp.lt.s32.totalorder %s1468_s19, %s1461_s11 }
  0x25   : > { %p1465_p12 = pneg %p1464_p2  ;;  %p1471_p5 = por %p1470_p4, %p1469_p11 }
  0x27   : > { %p1472_p7 = pnand %p1471_p5, %p1465_p12 }
  0x29   : > { %1475 = shalt.err (!%p1472_p7)
}
  0x2a   : > { %s1545_s20 = smov 1024   ;;  %s1546_s21 = smov 64  }
  0x2b   : > { %1403 = dma.hbm_to_vmem [thread:$0]  (!%p1621_p13), %s1619_s24, 49152, %s1625_s27, %s1627_s28, %s1545_s20, %s1545_s20, %s1546_s21  }
  0x2c   : > { %p1383_p9 = scmp.ge.s32.totalorder %s1542_s9, 1  ;;  %p107_p1 = scmp.lt.s32.totalorder %s1542_s9, 3 }
  0x2e   : > { %p108_p3 = pnand %p1383_p9, %p107_p1 }
  0x2f   : > { %s1658_s22 = sand.u32 (!%p108_p3), 1, %s1534_s7  }
  0x30   : > { %111 = sbr.rel (%p108_p3) target bundleno = 272 (0x110), region = 24  ;;  %s114_s26 = scalar_lea.sflag (!%p108_p3), [#allocation3], %s1658_s22 }
  0x31   : > { %s1395_s23 = smul.u32 (!%p108_p3), 3072, %s1658_s22 }
  0x33   : > { %s1662_s29 = scalar_lea.vmem (!%p108_p3), [#allocation2], %s1395_s23 }
  0x37   : > { %1521 = dma.done.wait (%p1599_p6), %s114_s26, 49152  }
  0x38   : > { %1523 = vsyncadd (%p1599_p6), %s114_s26, 4294918144  ;;  %v138_v0 = vld [vmem:[%s1662_s29] sm:$0xff]  ;;  %v139_v1 = vld [vmem:[%s1662_s29 + $0x8] sm:$0xff]  ;;  %s1393_s24 = smul.u32 49152, %s1581_s10  ;;  %s1678_s16 = scalar_lea.vmem [#allocation5], %s1395_s23 }
  0x39   : > { %v140_v2 = vld [vmem:[%s1662_s29 + $0x10] sm:$0xff]  ;;  %v522_v3 = vmax.f32 %v138_v0, 0.0  ;;  %v523_v4 = vmax.f32 %v139_v1, 0.0  ;;  %v141_v6 = vld [vmem:[%s1662_s29 + $0x18] sm:$0xff]  ;;  %v142_v7 = vld [vmem:[%s1662_s29 + $0x20] sm:$0xff]  ;;  %s1305_s30 = sshll.u32 %s1678_s16, 4  ;;  %s2444_s30 = int_to_ptr.vmem [resolvable:$true] %s1305_s30 }
  0x3a   : > { %v524_v5 = vmax.f32 %v140_v2, 0.0  ;;  %v143_v8 = vld [vmem:[%s1662_s29 + $0x28] sm:$0xff]  ;;  %v525_v9 = vmax.f32 %v141_v6, 0.0  ;;  %v526_v10 = vmax.f32 %v142_v7, 0.0  ;;  %v144_v12 = vld [vmem:[%s1662_s29 + $0x30] sm:$0xff]  ;;  %v145_v13 = vld [vmem:[%s1662_s29 + $0x38] sm:$0xff]  ;;  %s2435_s28 = scalar_lea.hbm %s2492_s1, %s1393_s24 }
  0x3b   : > { %v527_v11 = vmax.f32 %v143_v8, 0.0  ;;  %v146_v14 = vld [vmem:[%s1662_s29 + $0x40] sm:$0xff]  ;;  %906 = vst [vmem:[%s1678_s16] sm:$0xff] %v522_v3  ;;  %907 = vst [vmem:[%s1678_s16 + $0x8] sm:$0xff] %v523_v4  ;;  %v528_v15 = vmax.f32 %v144_v12, 0.0  ;;  %v529_v16 = vmax.f32 %v145_v13, 0.0  ;;  %v147_v18 = vld [vmem:[%s1662_s29 + $0x48] sm:$0xff] }
  0x3c   : > { %908 = vst [vmem:[%s1678_s16 + $0x10] sm:$0xff] %v524_v5  ;;  %v530_v17 = vmax.f32 %v146_v14, 0.0  ;;  %v148_v19 = vld [vmem:[%s1662_s29 + $0x50] sm:$0xff]  ;;  %v149_v20 = vld [vmem:[%s1662_s29 + $0x58] sm:$0xff]  ;;  %909 = vst [vmem:[%s1678_s16 + $0x18] sm:$0xff] %v525_v9  ;;  %v531_v21 = vmax.f32 %v147_v18, 0.0 }
  0x3d   : > { %910 = vst [vmem:[%s1678_s16 + $0x20] sm:$0xff] %v526_v10  ;;  %911 = vst [vmem:[%s1678_s16 + $0x28] sm:$0xff] %v527_v11  ;;  %v532_v22 = vmax.f32 %v148_v19, 0.0  ;;  %v533_v23 = vmax.f32 %v149_v20, 0.0  ;;  %v150_v24 = vld [vmem:[%s1662_s29 + $0x60] sm:$0xff]  ;;  %v151_v25 = vld [vmem:[%s1662_s29 + $0x68] sm:$0xff] }
  0x3e   : > { %v152_v26 = vld [vmem:[%s1662_s29 + $0x70] sm:$0xff]  ;;  %912 = vst [vmem:[%s1678_s16 + $0x30] sm:$0xff] %v528_v15  ;;  %913 = vst [vmem:[%s1678_s16 + $0x38] sm:$0xff] %v529_v16  ;;  %v534_v27 = vmax.f32 %v150_v24, 0.0  ;;  %v535_v28 = vmax.f32 %v151_v25, 0.0  ;;  %v153_v30 = vld [vmem:[%s1662_s29 + $0x78] sm:$0xff] }
  0x3f   : > { %914 = vst [vmem:[%s1678_s16 + $0x40] sm:$0xff] %v530_v17  ;;  %v536_v29 = vmax.f32 %v152_v26, 0.0  ;;  %v154_v31 = vld [vmem:[%s1662_s29 + $0x80] sm:$0xff]  ;;  %v155_v32 = vld [vmem:[%s1662_s29 + $0x88] sm:$0xff]  ;;  %915 = vst [vmem:[%s1678_s16 + $0x48] sm:$0xff] %v531_v21  ;;  %v537_v33 = vmax.f32 %v153_v30, 0.0 }
  0x40   : > { %916 = vst [vmem:[%s1678_s16 + $0x50] sm:$0xff] %v532_v22  ;;  %917 = vst [vmem:[%s1678_s16 + $0x58] sm:$0xff] %v533_v23  ;;  %v538_v34 = vmax.f32 %v154_v31, 0.0  ;;  %v539_v35 = vmax.f32 %v155_v32, 0.0  ;;  %v156_v36 = vld [vmem:[%s1662_s29 + $0x90] sm:$0xff]  ;;  %v157_v37 = vld [vmem:[%s1662_s29 + $0x98] sm:$0xff] }
  0x41   : > { %v158_v38 = vld [vmem:[%s1662_s29 + $0xa0] sm:$0xff]  ;;  %918 = vst [vmem:[%s1678_s16 + $0x60] sm:$0xff] %v534_v27  ;;  %919 = vst [vmem:[%s1678_s16 + $0x68] sm:$0xff] %v535_v28  ;;  %v540_v39 = vmax.f32 %v156_v36, 0.0  ;;  %v541_v40 = vmax.f32 %v157_v37, 0.0  ;;  %v159_v42 = vld [vmem:[%s1662_s29 + $0xa8] sm:$0xff] }
  0x42   : > { %920 = vst [vmem:[%s1678_s16 + $0x70] sm:$0xff] %v536_v29  ;;  %v542_v41 = vmax.f32 %v158_v38, 0.0  ;;  %v160_v43 = vld [vmem:[%s1662_s29 + $0xb0] sm:$0xff]  ;;  %v161_v44 = vld [vmem:[%s1662_s29 + $0xb8] sm:$0xff]  ;;  %921 = vst [vmem:[%s1678_s16 + $0x78] sm:$0xff] %v537_v33  ;;  %v543_v45 = vmax.f32 %v159_v42, 0.0 }
  0x43   : > { %922 = vst [vmem:[%s1678_s16 + $0x80] sm:$0xff] %v538_v34  ;;  %923 = vst [vmem:[%s1678_s16 + $0x88] sm:$0xff] %v539_v35  ;;  %v544_v46 = vmax.f32 %v160_v43, 0.0  ;;  %v545_v47 = vmax.f32 %v161_v44, 0.0  ;;  %v162_v48 = vld [vmem:[%s1662_s29 + $0xc0] sm:$0xff]  ;;  %v163_v49 = vld [vmem:[%s1662_s29 + $0xc8] sm:$0xff] }
  0x44   : > { %v164_v50 = vld [vmem:[%s1662_s29 + $0xd0] sm:$0xff]  ;;  %924 = vst [vmem:[%s1678_s16 + $0x90] sm:$0xff] %v540_v39  ;;  %925 = vst [vmem:[%s1678_s16 + $0x98] sm:$0xff] %v541_v40  ;;  %v546_v51 = vmax.f32 %v162_v48, 0.0  ;;  %v547_v52 = vmax.f32 %v163_v49, 0.0  ;;  %v165_v54 = vld [vmem:[%s1662_s29 + $0xd8] sm:$0xff] }
  0x45   : > { %926 = vst [vmem:[%s1678_s16 + $0xa0] sm:$0xff] %v542_v41  ;;  %v548_v53 = vmax.f32 %v164_v50, 0.0  ;;  %v166_v55 = vld [vmem:[%s1662_s29 + $0xe0] sm:$0xff]  ;;  %v167_v56 = vld [vmem:[%s1662_s29 + $0xe8] sm:$0xff]  ;;  %927 = vst [vmem:[%s1678_s16 + $0xa8] sm:$0xff] %v543_v45  ;;  %v549_v57 = vmax.f32 %v165_v54, 0.0 }
  0x46   : > { %928 = vst [vmem:[%s1678_s16 + $0xb0] sm:$0xff] %v544_v46  ;;  %929 = vst [vmem:[%s1678_s16 + $0xb8] sm:$0xff] %v545_v47  ;;  %v550_v58 = vmax.f32 %v166_v55, 0.0  ;;  %v551_v59 = vmax.f32 %v167_v56, 0.0  ;;  %v168_v60 = vld [vmem:[%s1662_s29 + $0xf0] sm:$0xff]  ;;  %v169_v61 = vld [vmem:[%s1662_s29 + $0xf8] sm:$0xff] }
  0x47   : > { %v170_v62 = vld [vmem:[%s1662_s29 + $0x100] sm:$0xff]  ;;  %930 = vst [vmem:[%s1678_s16 + $0xc0] sm:$0xff] %v546_v51  ;;  %931 = vst [vmem:[%s1678_s16 + $0xc8] sm:$0xff] %v547_v52  ;;  %v552_v63 = vmax.f32 %v168_v60, 0.0  ;;  %v553_v0 = vmax.f32 %v169_v61, 0.0  ;;  %v171_v2 = vld [vmem:[%s1662_s29 + $0x108] sm:$0xff] }
  0x48   : > { %932 = vst [vmem:[%s1678_s16 + $0xd0] sm:$0xff] %v548_v53  ;;  %v554_v1 = vmax.f32 %v170_v62, 0.0  ;;  %v172_v3 = vld [vmem:[%s1662_s29 + $0x110] sm:$0xff]  ;;  %v173_v4 = vld [vmem:[%s1662_s29 + $0x118] sm:$0xff]  ;;  %933 = vst [vmem:[%s1678_s16 + $0xd8] sm:$0xff] %v549_v57  ;;  %v555_v5 = vmax.f32 %v171_v2, 0.0 }
  0x49   : > { %934 = vst [vmem:[%s1678_s16 + $0xe0] sm:$0xff] %v550_v58  ;;  %935 = vst [vmem:[%s1678_s16 + $0xe8] sm:$0xff] %v551_v59  ;;  %v556_v6 = vmax.f32 %v172_v3, 0.0  ;;  %v557_v7 = vmax.f32 %v173_v4, 0.0  ;;  %v174_v8 = vld [vmem:[%s1662_s29 + $0x120] sm:$0xff]  ;;  %v175_v9 = vld [vmem:[%s1662_s29 + $0x128] sm:$0xff] }
  0x4a   : > { %v176_v10 = vld [vmem:[%s1662_s29 + $0x130] sm:$0xff]  ;;  %936 = vst [vmem:[%s1678_s16 + $0xf0] sm:$0xff] %v552_v63  ;;  %937 = vst [vmem:[%s1678_s16 + $0xf8] sm:$0xff] %v553_v0  ;;  %v558_v11 = vmax.f32 %v174_v8, 0.0  ;;  %v559_v12 = vmax.f32 %v175_v9, 0.0  ;;  %v177_v14 = vld [vmem:[%s1662_s29 + $0x138] sm:$0xff] }
  0x4b   : > { %938 = vst [vmem:[%s1678_s16 + $0x100] sm:$0xff] %v554_v1  ;;  %v560_v13 = vmax.f32 %v176_v10, 0.0  ;;  %v178_v15 = vld [vmem:[%s1662_s29 + $0x140] sm:$0xff]  ;;  %v179_v16 = vld [vmem:[%s1662_s29 + $0x148] sm:$0xff]  ;;  %939 = vst [vmem:[%s1678_s16 + $0x108] sm:$0xff] %v555_v5  ;;  %v561_v17 = vmax.f32 %v177_v14, 0.0 }
  0x4c   : > { %940 = vst [vmem:[%s1678_s16 + $0x110] sm:$0xff] %v556_v6  ;;  %941 = vst [vmem:[%s1678_s16 + $0x118] sm:$0xff] %v557_v7  ;;  %v562_v18 = vmax.f32 %v178_v15, 0.0  ;;  %v563_v19 = vmax.f32 %v179_v16, 0.0  ;;  %v180_v20 = vld [vmem:[%s1662_s29 + $0x150] sm:$0xff]  ;;  %v181_v21 = vld [vmem:[%s1662_s29 + $0x158] sm:$0xff] }
  0x4d   : > { %v182_v22 = vld [vmem:[%s1662_s29 + $0x160] sm:$0xff]  ;;  %942 = vst [vmem:[%s1678_s16 + $0x120] sm:$0xff] %v558_v11  ;;  %943 = vst [vmem:[%s1678_s16 + $0x128] sm:$0xff] %v559_v12  ;;  %v564_v23 = vmax.f32 %v180_v20, 0.0  ;;  %v565_v24 = vmax.f32 %v181_v21, 0.0  ;;  %v183_v26 = vld [vmem:[%s1662_s29 + $0x168] sm:$0xff] }
  0x4e   : > { %944 = vst [vmem:[%s1678_s16 + $0x130] sm:$0xff] %v560_v13  ;;  %v566_v25 = vmax.f32 %v182_v22, 0.0  ;;  %v184_v27 = vld [vmem:[%s1662_s29 + $0x170] sm:$0xff]  ;;  %v185_v28 = vld [vmem:[%s1662_s29 + $0x178] sm:$0xff]  ;;  %945 = vst [vmem:[%s1678_s16 + $0x138] sm:$0xff] %v561_v17  ;;  %v567_v29 = vmax.f32 %v183_v26, 0.0 }
  0x4f   : > { %946 = vst [vmem:[%s1678_s16 + $0x140] sm:$0xff] %v562_v18  ;;  %947 = vst [vmem:[%s1678_s16 + $0x148] sm:$0xff] %v563_v19  ;;  %v568_v30 = vmax.f32 %v184_v27, 0.0  ;;  %v569_v31 = vmax.f32 %v185_v28, 0.0  ;;  %v186_v32 = vld [vmem:[%s1662_s29 + $0x180] sm:$0xff]  ;;  %v187_v33 = vld [vmem:[%s1662_s29 + $0x188] sm:$0xff] }
  0x50   : > { %v188_v34 = vld [vmem:[%s1662_s29 + $0x190] sm:$0xff]  ;;  %948 = vst [vmem:[%s1678_s16 + $0x150] sm:$0xff] %v564_v23  ;;  %949 = vst [vmem:[%s1678_s16 + $0x158] sm:$0xff] %v565_v24  ;;  %v570_v35 = vmax.f32 %v186_v32, 0.0  ;;  %v571_v36 = vmax.f32 %v187_v33, 0.0  ;;  %v189_v38 = vld [vmem:[%s1662_s29 + $0x198] sm:$0xff] }
  0x51   : > { %950 = vst [vmem:[%s1678_s16 + $0x160] sm:$0xff] %v566_v25  ;;  %v572_v37 = vmax.f32 %v188_v34, 0.0  ;;  %v190_v39 = vld [vmem:[%s1662_s29 + $0x1a0] sm:$0xff]  ;;  %v191_v40 = vld [vmem:[%s1662_s29 + $0x1a8] sm:$0xff]  ;;  %951 = vst [vmem:[%s1678_s16 + $0x168] sm:$0xff] %v567_v29  ;;  %v573_v41 = vmax.f32 %v189_v38, 0.0 }
  0x52   : > { %952 = vst [vmem:[%s1678_s16 + $0x170] sm:$0xff] %v568_v30  ;;  %953 = vst [vmem:[%s1678_s16 + $0x178] sm:$0xff] %v569_v31  ;;  %v574_v42 = vmax.f32 %v190_v39, 0.0  ;;  %v575_v43 = vmax.f32 %v191_v40, 0.0  ;;  %v192_v44 = vld [vmem:[%s1662_s29 + $0x1b0] sm:$0xff]  ;;  %v193_v45 = vld [vmem:[%s1662_s29 + $0x1b8] sm:$0xff] }
  0x53   : > { %v194_v46 = vld [vmem:[%s1662_s29 + $0x1c0] sm:$0xff]  ;;  %954 = vst [vmem:[%s1678_s16 + $0x180] sm:$0xff] %v570_v35  ;;  %955 = vst [vmem:[%s1678_s16 + $0x188] sm:$0xff] %v571_v36  ;;  %v576_v47 = vmax.f32 %v192_v44, 0.0  ;;  %v577_v48 = vmax.f32 %v193_v45, 0.0  ;;  %v195_v50 = vld [vmem:[%s1662_s29 + $0x1c8] sm:$0xff] }
  0x54   : > { %956 = vst [vmem:[%s1678_s16 + $0x190] sm:$0xff] %v572_v37  ;;  %v578_v49 = vmax.f32 %v194_v46, 0.0  ;;  %v196_v51 = vld [vmem:[%s1662_s29 + $0x1d0] sm:$0xff]  ;;  %v197_v52 = vld [vmem:[%s1662_s29 + $0x1d8] sm:$0xff]  ;;  %957 = vst [vmem:[%s1678_s16 + $0x198] sm:$0xff] %v573_v41  ;;  %v579_v53 = vmax.f32 %v195_v50, 0.0 }
  0x55   : > { %958 = vst [vmem:[%s1678_s16 + $0x1a0] sm:$0xff] %v574_v42  ;;  %959 = vst [vmem:[%s1678_s16 + $0x1a8] sm:$0xff] %v575_v43  ;;  %v580_v54 = vmax.f32 %v196_v51, 0.0  ;;  %v581_v55 = vmax.f32 %v197_v52, 0.0  ;;  %v198_v56 = vld [vmem:[%s1662_s29 + $0x1e0] sm:$0xff]  ;;  %v199_v57 = vld [vmem:[%s1662_s29 + $0x1e8] sm:$0xff] }
  0x56   : > { %v200_v58 = vld [vmem:[%s1662_s29 + $0x1f0] sm:$0xff]  ;;  %960 = vst [vmem:[%s1678_s16 + $0x1b0] sm:$0xff] %v576_v47  ;;  %961 = vst [vmem:[%s1678_s16 + $0x1b8] sm:$0xff] %v577_v48  ;;  %v582_v59 = vmax.f32 %v198_v56, 0.0  ;;  %v583_v60 = vmax.f32 %v199_v57, 0.0  ;;  %v201_v62 = vld [vmem:[%s1662_s29 + $0x1f8] sm:$0xff] }
  0x57   : > { %962 = vst [vmem:[%s1678_s16 + $0x1c0] sm:$0xff] %v578_v49  ;;  %v584_v61 = vmax.f32 %v200_v58, 0.0  ;;  %v202_v63 = vld [vmem:[%s1662_s29 + $0x200] sm:$0xff]  ;;  %v203_v0 = vld [vmem:[%s1662_s29 + $0x208] sm:$0xff]  ;;  %963 = vst [vmem:[%s1678_s16 + $0x1c8] sm:$0xff] %v579_v53  ;;  %v585_v1 = vmax.f32 %v201_v62, 0.0 }
  0x58   : > { %964 = vst [vmem:[%s1678_s16 + $0x1d0] sm:$0xff] %v580_v54  ;;  %965 = vst [vmem:[%s1678_s16 + $0x1d8] sm:$0xff] %v581_v55  ;;  %v586_v2 = vmax.f32 %v202_v63, 0.0  ;;  %v587_v3 = vmax.f32 %v203_v0, 0.0  ;;  %v204_v4 = vld [vmem:[%s1662_s29 + $0x210] sm:$0xff]  ;;  %v205_v5 = vld [vmem:[%s1662_s29 + $0x218] sm:$0xff] }
  0x59   : > { %v206_v6 = vld [vmem:[%s1662_s29 + $0x220] sm:$0xff]  ;;  %966 = vst [vmem:[%s1678_s16 + $0x1e0] sm:$0xff] %v582_v59  ;;  %967 = vst [vmem:[%s1678_s16 + $0x1e8] sm:$0xff] %v583_v60  ;;  %v588_v7 = vmax.f32 %v204_v4, 0.0  ;;  %v589_v8 = vmax.f32 %v205_v5, 0.0  ;;  %v207_v10 = vld [vmem:[%s1662_s29 + $0x228] sm:$0xff] }
  0x5a   : > { %968 = vst [vmem:[%s1678_s16 + $0x1f0] sm:$0xff] %v584_v61  ;;  %v590_v9 = vmax.f32 %v206_v6, 0.0  ;;  %v208_v11 = vld [vmem:[%s1662_s29 + $0x230] sm:$0xff]  ;;  %v209_v12 = vld [vmem:[%s1662_s29 + $0x238] sm:$0xff]  ;;  %969 = vst [vmem:[%s1678_s16 + $0x1f8] sm:$0xff] %v585_v1  ;;  %v591_v13 = vmax.f32 %v207_v10, 0.0 }
  0x5b   : > { %970 = vst [vmem:[%s1678_s16 + $0x200] sm:$0xff] %v586_v2  ;;  %971 = vst [vmem:[%s1678_s16 + $0x208] sm:$0xff] %v587_v3  ;;  %v592_v14 = vmax.f32 %v208_v11, 0.0  ;;  %v593_v15 = vmax.f32 %v209_v12, 0.0  ;;  %v210_v16 = vld [vmem:[%s1662_s29 + $0x240] sm:$0xff]  ;;  %v211_v17 = vld [vmem:[%s1662_s29 + $0x248] sm:$0xff] }
  0x5c   : > { %v212_v18 = vld [vmem:[%s1662_s29 + $0x250] sm:$0xff]  ;;  %972 = vst [vmem:[%s1678_s16 + $0x210] sm:$0xff] %v588_v7  ;;  %973 = vst [vmem:[%s1678_s16 + $0x218] sm:$0xff] %v589_v8  ;;  %v594_v19 = vmax.f32 %v210_v16, 0.0  ;;  %v595_v20 = vmax.f32 %v211_v17, 0.0  ;;  %v213_v22 = vld [vmem:[%s1662_s29 + $0x258] sm:$0xff] }
  0x5d   : > { %974 = vst [vmem:[%s1678_s16 + $0x220] sm:$0xff] %v590_v9  ;;  %v596_v21 = vmax.f32 %v212_v18, 0.0  ;;  %v214_v23 = vld [vmem:[%s1662_s29 + $0x260] sm:$0xff]  ;;  %v215_v24 = vld [vmem:[%s1662_s29 + $0x268] sm:$0xff]  ;;  %975 = vst [vmem:[%s1678_s16 + $0x228] sm:$0xff] %v591_v13  ;;  %v597_v25 = vmax.f32 %v213_v22, 0.0 }
  0x5e   : > { %976 = vst [vmem:[%s1678_s16 + $0x230] sm:$0xff] %v592_v14  ;;  %977 = vst [vmem:[%s1678_s16 + $0x238] sm:$0xff] %v593_v15  ;;  %v598_v26 = vmax.f32 %v214_v23, 0.0  ;;  %v599_v27 = vmax.f32 %v215_v24, 0.0  ;;  %v216_v28 = vld [vmem:[%s1662_s29 + $0x270] sm:$0xff]  ;;  %v217_v29 = vld [vmem:[%s1662_s29 + $0x278] sm:$0xff] }
  0x5f   : > { %v218_v30 = vld [vmem:[%s1662_s29 + $0x280] sm:$0xff]  ;;  %978 = vst [vmem:[%s1678_s16 + $0x240] sm:$0xff] %v594_v19  ;;  %979 = vst [vmem:[%s1678_s16 + $0x248] sm:$0xff] %v595_v20  ;;  %v600_v31 = vmax.f32 %v216_v28, 0.0  ;;  %v601_v32 = vmax.f32 %v217_v29, 0.0  ;;  %v219_v34 = vld [vmem:[%s1662_s29 + $0x288] sm:$0xff] }
  0x60   : > { %980 = vst [vmem:[%s1678_s16 + $0x250] sm:$0xff] %v596_v21  ;;  %v602_v33 = vmax.f32 %v218_v30, 0.0  ;;  %v220_v35 = vld [vmem:[%s1662_s29 + $0x290] sm:$0xff]  ;;  %v221_v36 = vld [vmem:[%s1662_s29 + $0x298] sm:$0xff]  ;;  %981 = vst [vmem:[%s1678_s16 + $0x258] sm:$0xff] %v597_v25  ;;  %v603_v37 = vmax.f32 %v219_v34, 0.0 }
  0x61   : > { %982 = vst [vmem:[%s1678_s16 + $0x260] sm:$0xff] %v598_v26  ;;  %983 = vst [vmem:[%s1678_s16 + $0x268] sm:$0xff] %v599_v27  ;;  %v604_v38 = vmax.f32 %v220_v35, 0.0  ;;  %v605_v39 = vmax.f32 %v221_v36, 0.0  ;;  %v222_v40 = vld [vmem:[%s1662_s29 + $0x2a0] sm:$0xff]  ;;  %v223_v41 = vld [vmem:[%s1662_s29 + $0x2a8] sm:$0xff] }
  0x62   : > { %v224_v42 = vld [vmem:[%s1662_s29 + $0x2b0] sm:$0xff]  ;;  %984 = vst [vmem:[%s1678_s16 + $0x270] sm:$0xff] %v600_v31  ;;  %985 = vst [vmem:[%s1678_s16 + $0x278] sm:$0xff] %v601_v32  ;;  %v606_v43 = vmax.f32 %v222_v40, 0.0  ;;  %v607_v44 = vmax.f32 %v223_v41, 0.0  ;;  %v225_v46 = vld [vmem:[%s1662_s29 + $0x2b8] sm:$0xff] }
  0x63   : > { %986 = vst [vmem:[%s1678_s16 + $0x280] sm:$0xff] %v602_v33  ;;  %v608_v45 = vmax.f32 %v224_v42, 0.0  ;;  %v226_v47 = vld [vmem:[%s1662_s29 + $0x2c0] sm:$0xff]  ;;  %v227_v48 = vld [vmem:[%s1662_s29 + $0x2c8] sm:$0xff]  ;;  %987 = vst [vmem:[%s1678_s16 + $0x288] sm:$0xff] %v603_v37  ;;  %v609_v49 = vmax.f32 %v225_v46, 0.0 }
  0x64   : > { %988 = vst [vmem:[%s1678_s16 + $0x290] sm:$0xff] %v604_v38  ;;  %989 = vst [vmem:[%s1678_s16 + $0x298] sm:$0xff] %v605_v39  ;;  %v610_v50 = vmax.f32 %v226_v47, 0.0  ;;  %v611_v51 = vmax.f32 %v227_v48, 0.0  ;;  %v228_v52 = vld [vmem:[%s1662_s29 + $0x2d0] sm:$0xff]  ;;  %v229_v53 = vld [vmem:[%s1662_s29 + $0x2d8] sm:$0xff] }
  0x65   : > { %v230_v54 = vld [vmem:[%s1662_s29 + $0x2e0] sm:$0xff]  ;;  %990 = vst [vmem:[%s1678_s16 + $0x2a0] sm:$0xff] %v606_v43  ;;  %991 = vst [vmem:[%s1678_s16 + $0x2a8] sm:$0xff] %v607_v44  ;;  %v612_v55 = vmax.f32 %v228_v52, 0.0  ;;  %v613_v56 = vmax.f32 %v229_v53, 0.0  ;;  %v231_v58 = vld [vmem:[%s1662_s29 + $0x2e8] sm:$0xff] }
  0x66   : > { %992 = vst [vmem:[%s1678_s16 + $0x2b0] sm:$0xff] %v608_v45  ;;  %v614_v57 = vmax.f32 %v230_v54, 0.0  ;;  %v232_v59 = vld [vmem:[%s1662_s29 + $0x2f0] sm:$0xff]  ;;  %v233_v60 = vld [vmem:[%s1662_s29 + $0x2f8] sm:$0xff]  ;;  %993 = vst [vmem:[%s1678_s16 + $0x2b8] sm:$0xff] %v609_v49  ;;  %v615_v61 = vmax.f32 %v231_v58, 0.0 }
  0x67   : > { %994 = vst [vmem:[%s1678_s16 + $0x2c0] sm:$0xff] %v610_v50  ;;  %995 = vst [vmem:[%s1678_s16 + $0x2c8] sm:$0xff] %v611_v51  ;;  %v616_v62 = vmax.f32 %v232_v59, 0.0  ;;  %v617_v63 = vmax.f32 %v233_v60, 0.0  ;;  %v234_v0 = vld [vmem:[%s1662_s29 + $0x300] sm:$0xff]  ;;  %v235_v1 = vld [vmem:[%s1662_s29 + $0x308] sm:$0xff] }
  0x68   : > { %v236_v2 = vld [vmem:[%s1662_s29 + $0x310] sm:$0xff]  ;;  %996 = vst [vmem:[%s1678_s16 + $0x2d0] sm:$0xff] %v612_v55  ;;  %997 = vst [vmem:[%s1678_s16 + $0x2d8] sm:$0xff] %v613_v56  ;;  %v618_v3 = vmax.f32 %v234_v0, 0.0  ;;  %v619_v4 = vmax.f32 %v235_v1, 0.0  ;;  %v237_v6 = vld [vmem:[%s1662_s29 + $0x318] sm:$0xff] }
  0x69   : > { %998 = vst [vmem:[%s1678_s16 + $0x2e0] sm:$0xff] %v614_v57  ;;  %v620_v5 = vmax.f32 %v236_v2, 0.0  ;;  %v238_v7 = vld [vmem:[%s1662_s29 + $0x320] sm:$0xff]  ;;  %v239_v8 = vld [vmem:[%s1662_s29 + $0x328] sm:$0xff]  ;;  %999 = vst [vmem:[%s1678_s16 + $0x2e8] sm:$0xff] %v615_v61  ;;  %v621_v9 = vmax.f32 %v237_v6, 0.0 }
  0x6a   : > { %1000 = vst [vmem:[%s1678_s16 + $0x2f0] sm:$0xff] %v616_v62  ;;  %1001 = vst [vmem:[%s1678_s16 + $0x2f8] sm:$0xff] %v617_v63  ;;  %v622_v10 = vmax.f32 %v238_v7, 0.0  ;;  %v623_v11 = vmax.f32 %v239_v8, 0.0  ;;  %v240_v12 = vld [vmem:[%s1662_s29 + $0x330] sm:$0xff]  ;;  %v241_v13 = vld [vmem:[%s1662_s29 + $0x338] sm:$0xff] }
  0x6b   : > { %v242_v14 = vld [vmem:[%s1662_s29 + $0x340] sm:$0xff]  ;;  %1002 = vst [vmem:[%s1678_s16 + $0x300] sm:$0xff] %v618_v3  ;;  %1003 = vst [vmem:[%s1678_s16 + $0x308] sm:$0xff] %v619_v4  ;;  %v624_v15 = vmax.f32 %v240_v12, 0.0  ;;  %v625_v16 = vmax.f32 %v241_v13, 0.0  ;;  %v243_v18 = vld [vmem:[%s1662_s29 + $0x348] sm:$0xff] }
  0x6c   : > { %1004 = vst [vmem:[%s1678_s16 + $0x310] sm:$0xff] %v620_v5  ;;  %v626_v17 = vmax.f32 %v242_v14, 0.0  ;;  %v244_v19 = vld [vmem:[%s1662_s29 + $0x350] sm:$0xff]  ;;  %v245_v20 = vld [vmem:[%s1662_s29 + $0x358] sm:$0xff]  ;;  %1005 = vst [vmem:[%s1678_s16 + $0x318] sm:$0xff] %v621_v9  ;;  %v627_v21 = vmax.f32 %v243_v18, 0.0 }
  0x6d   : > { %1006 = vst [vmem:[%s1678_s16 + $0x320] sm:$0xff] %v622_v10  ;;  %1007 = vst [vmem:[%s1678_s16 + $0x328] sm:$0xff] %v623_v11  ;;  %v628_v22 = vmax.f32 %v244_v19, 0.0  ;;  %v629_v23 = vmax.f32 %v245_v20, 0.0  ;;  %v246_v24 = vld [vmem:[%s1662_s29 + $0x360] sm:$0xff]  ;;  %v247_v25 = vld [vmem:[%s1662_s29 + $0x368] sm:$0xff] }
  0x6e   : > { %v248_v26 = vld [vmem:[%s1662_s29 + $0x370] sm:$0xff]  ;;  %1008 = vst [vmem:[%s1678_s16 + $0x330] sm:$0xff] %v624_v15  ;;  %1009 = vst [vmem:[%s1678_s16 + $0x338] sm:$0xff] %v625_v16  ;;  %v630_v27 = vmax.f32 %v246_v24, 0.0  ;;  %v631_v28 = vmax.f32 %v247_v25, 0.0  ;;  %v249_v30 = vld [vmem:[%s1662_s29 + $0x378] sm:$0xff] }
  0x6f   : > { %1010 = vst [vmem:[%s1678_s16 + $0x340] sm:$0xff] %v626_v17  ;;  %v632_v29 = vmax.f32 %v248_v26, 0.0  ;;  %v250_v31 = vld [vmem:[%s1662_s29 + $0x380] sm:$0xff]  ;;  %v251_v32 = vld [vmem:[%s1662_s29 + $0x388] sm:$0xff]  ;;  %1011 = vst [vmem:[%s1678_s16 + $0x348] sm:$0xff] %v627_v21  ;;  %v633_v33 = vmax.f32 %v249_v30, 0.0 }
  0x70   : > { %1012 = vst [vmem:[%s1678_s16 + $0x350] sm:$0xff] %v628_v22  ;;  %1013 = vst [vmem:[%s1678_s16 + $0x358] sm:$0xff] %v629_v23  ;;  %v634_v34 = vmax.f32 %v250_v31, 0.0  ;;  %v635_v35 = vmax.f32 %v251_v32, 0.0  ;;  %v252_v36 = vld [vmem:[%s1662_s29 + $0x390] sm:$0xff]  ;;  %v253_v37 = vld [vmem:[%s1662_s29 + $0x398] sm:$0xff] }
  0x71   : > { %v254_v38 = vld [vmem:[%s1662_s29 + $0x3a0] sm:$0xff]  ;;  %1014 = vst [vmem:[%s1678_s16 + $0x360] sm:$0xff] %v630_v27  ;;  %1015 = vst [vmem:[%s1678_s16 + $0x368] sm:$0xff] %v631_v28  ;;  %v636_v39 = vmax.f32 %v252_v36, 0.0  ;;  %v637_v40 = vmax.f32 %v253_v37, 0.0  ;;  %v255_v42 = vld [vmem:[%s1662_s29 + $0x3a8] sm:$0xff] }
  0x72   : > { %1016 = vst [vmem:[%s1678_s16 + $0x370] sm:$0xff] %v632_v29  ;;  %v638_v41 = vmax.f32 %v254_v38, 0.0  ;;  %v256_v43 = vld [vmem:[%s1662_s29 + $0x3b0] sm:$0xff]  ;;  %v257_v44 = vld [vmem:[%s1662_s29 + $0x3b8] sm:$0xff]  ;;  %1017 = vst [vmem:[%s1678_s16 + $0x378] sm:$0xff] %v633_v33  ;;  %v639_v45 = vmax.f32 %v255_v42, 0.0 }
  0x73   : > { %1018 = vst [vmem:[%s1678_s16 + $0x380] sm:$0xff] %v634_v34  ;;  %1019 = vst [vmem:[%s1678_s16 + $0x388] sm:$0xff] %v635_v35  ;;  %v640_v46 = vmax.f32 %v256_v43, 0.0  ;;  %v641_v47 = vmax.f32 %v257_v44, 0.0  ;;  %v258_v48 = vld [vmem:[%s1662_s29 + $0x3c0] sm:$0xff]  ;;  %v259_v49 = vld [vmem:[%s1662_s29 + $0x3c8] sm:$0xff] }
  0x74   : > { %v260_v50 = vld [vmem:[%s1662_s29 + $0x3d0] sm:$0xff]  ;;  %1020 = vst [vmem:[%s1678_s16 + $0x390] sm:$0xff] %v636_v39  ;;  %1021 = vst [vmem:[%s1678_s16 + $0x398] sm:$0xff] %v637_v40  ;;  %v642_v51 = vmax.f32 %v258_v48, 0.0  ;;  %v643_v52 = vmax.f32 %v259_v49, 0.0  ;;  %v261_v54 = vld [vmem:[%s1662_s29 + $0x3d8] sm:$0xff] }
  0x75   : > { %1022 = vst [vmem:[%s1678_s16 + $0x3a0] sm:$0xff] %v638_v41  ;;  %v644_v53 = vmax.f32 %v260_v50, 0.0  ;;  %v262_v55 = vld [vmem:[%s1662_s29 + $0x3e0] sm:$0xff]  ;;  %v263_v56 = vld [vmem:[%s1662_s29 + $0x3e8] sm:$0xff]  ;;  %1023 = vst [vmem:[%s1678_s16 + $0x3a8] sm:$0xff] %v639_v45  ;;  %v645_v57 = vmax.f32 %v261_v54, 0.0 }
  0x76   : > { %1024 = vst [vmem:[%s1678_s16 + $0x3b0] sm:$0xff] %v640_v46  ;;  %1025 = vst [vmem:[%s1678_s16 + $0x3b8] sm:$0xff] %v641_v47  ;;  %v646_v58 = vmax.f32 %v262_v55, 0.0  ;;  %v647_v59 = vmax.f32 %v263_v56, 0.0  ;;  %v264_v60 = vld [vmem:[%s1662_s29 + $0x3f0] sm:$0xff]  ;;  %v265_v61 = vld [vmem:[%s1662_s29 + $0x3f8] sm:$0xff] }
  0x77   : > { %v266_v62 = vld [vmem:[%s1662_s29 + $0x400] sm:$0xff]  ;;  %1026 = vst [vmem:[%s1678_s16 + $0x3c0] sm:$0xff] %v642_v51  ;;  %1027 = vst [vmem:[%s1678_s16 + $0x3c8] sm:$0xff] %v643_v52  ;;  %v648_v63 = vmax.f32 %v264_v60, 0.0  ;;  %v649_v0 = vmax.f32 %v265_v61, 0.0  ;;  %v267_v2 = vld [vmem:[%s1662_s29 + $0x408] sm:$0xff] }
  0x78   : > { %1028 = vst [vmem:[%s1678_s16 + $0x3d0] sm:$0xff] %v644_v53  ;;  %v650_v1 = vmax.f32 %v266_v62, 0.0  ;;  %v268_v3 = vld [vmem:[%s1662_s29 + $0x410] sm:$0xff]  ;;  %v269_v4 = vld [vmem:[%s1662_s29 + $0x418] sm:$0xff]  ;;  %1029 = vst [vmem:[%s1678_s16 + $0x3d8] sm:$0xff] %v645_v57  ;;  %v651_v5 = vmax.f32 %v267_v2, 0.0 }
  0x79   : > { %1030 = vst [vmem:[%s1678_s16 + $0x3e0] sm:$0xff] %v646_v58  ;;  %1031 = vst [vmem:[%s1678_s16 + $0x3e8] sm:$0xff] %v647_v59  ;;  %v652_v6 = vmax.f32 %v268_v3, 0.0  ;;  %v653_v7 = vmax.f32 %v269_v4, 0.0  ;;  %v270_v8 = vld [vmem:[%s1662_s29 + $0x420] sm:$0xff]  ;;  %v271_v9 = vld [vmem:[%s1662_s29 + $0x428] sm:$0xff] }
  0x7a   : > { %v272_v10 = vld [vmem:[%s1662_s29 + $0x430] sm:$0xff]  ;;  %1032 = vst [vmem:[%s1678_s16 + $0x3f0] sm:$0xff] %v648_v63  ;;  %1033 = vst [vmem:[%s1678_s16 + $0x3f8] sm:$0xff] %v649_v0  ;;  %v654_v11 = vmax.f32 %v270_v8, 0.0  ;;  %v655_v12 = vmax.f32 %v271_v9, 0.0  ;;  %v273_v14 = vld [vmem:[%s1662_s29 + $0x438] sm:$0xff] }
  0x7b   : > { %1034 = vst [vmem:[%s1678_s16 + $0x400] sm:$0xff] %v650_v1  ;;  %v656_v13 = vmax.f32 %v272_v10, 0.0  ;;  %v274_v15 = vld [vmem:[%s1662_s29 + $0x440] sm:$0xff]  ;;  %v275_v16 = vld [vmem:[%s1662_s29 + $0x448] sm:$0xff]  ;;  %1035 = vst [vmem:[%s1678_s16 + $0x408] sm:$0xff] %v651_v5  ;;  %v657_v17 = vmax.f32 %v273_v14, 0.0 }
  0x7c   : > { %1036 = vst [vmem:[%s1678_s16 + $0x410] sm:$0xff] %v652_v6  ;;  %1037 = vst [vmem:[%s1678_s16 + $0x418] sm:$0xff] %v653_v7  ;;  %v658_v18 = vmax.f32 %v274_v15, 0.0  ;;  %v659_v19 = vmax.f32 %v275_v16, 0.0  ;;  %v276_v20 = vld [vmem:[%s1662_s29 + $0x450] sm:$0xff]  ;;  %v277_v21 = vld [vmem:[%s1662_s29 + $0x458] sm:$0xff] }
  0x7d   : > { %v278_v22 = vld [vmem:[%s1662_s29 + $0x460] sm:$0xff]  ;;  %1038 = vst [vmem:[%s1678_s16 + $0x420] sm:$0xff] %v654_v11  ;;  %1039 = vst [vmem:[%s1678_s16 + $0x428] sm:$0xff] %v655_v12  ;;  %v660_v23 = vmax.f32 %v276_v20, 0.0  ;;  %v661_v24 = vmax.f32 %v277_v21, 0.0  ;;  %v279_v26 = vld [vmem:[%s1662_s29 + $0x468] sm:$0xff] }
  0x7e   : > { %1040 = vst [vmem:[%s1678_s16 + $0x430] sm:$0xff] %v656_v13  ;;  %v662_v25 = vmax.f32 %v278_v22, 0.0  ;;  %v280_v27 = vld [vmem:[%s1662_s29 + $0x470] sm:$0xff]  ;;  %v281_v28 = vld [vmem:[%s1662_s29 + $0x478] sm:$0xff]  ;;  %1041 = vst [vmem:[%s1678_s16 + $0x438] sm:$0xff] %v657_v17  ;;  %v663_v29 = vmax.f32 %v279_v26, 0.0 }
  0x7f   : > { %1042 = vst [vmem:[%s1678_s16 + $0x440] sm:$0xff] %v658_v18  ;;  %1043 = vst [vmem:[%s1678_s16 + $0x448] sm:$0xff] %v659_v19  ;;  %v664_v30 = vmax.f32 %v280_v27, 0.0  ;;  %v665_v31 = vmax.f32 %v281_v28, 0.0  ;;  %v282_v32 = vld [vmem:[%s1662_s29 + $0x480] sm:$0xff]  ;;  %v283_v33 = vld [vmem:[%s1662_s29 + $0x488] sm:$0xff] }
  0x80   : > { %v284_v34 = vld [vmem:[%s1662_s29 + $0x490] sm:$0xff]  ;;  %1044 = vst [vmem:[%s1678_s16 + $0x450] sm:$0xff] %v660_v23  ;;  %1045 = vst [vmem:[%s1678_s16 + $0x458] sm:$0xff] %v661_v24  ;;  %v666_v35 = vmax.f32 %v282_v32, 0.0  ;;  %v667_v36 = vmax.f32 %v283_v33, 0.0  ;;  %v285_v38 = vld [vmem:[%s1662_s29 + $0x498] sm:$0xff] }
  0x81   : > { %1046 = vst [vmem:[%s1678_s16 + $0x460] sm:$0xff] %v662_v25  ;;  %v668_v37 = vmax.f32 %v284_v34, 0.0  ;;  %v286_v39 = vld [vmem:[%s1662_s29 + $0x4a0] sm:$0xff]  ;;  %v287_v40 = vld [vmem:[%s1662_s29 + $0x4a8] sm:$0xff]  ;;  %1047 = vst [vmem:[%s1678_s16 + $0x468] sm:$0xff] %v663_v29  ;;  %v669_v41 = vmax.f32 %v285_v38, 0.0 }
  0x82   : > { %1048 = vst [vmem:[%s1678_s16 + $0x470] sm:$0xff] %v664_v30  ;;  %1049 = vst [vmem:[%s1678_s16 + $0x478] sm:$0xff] %v665_v31  ;;  %v670_v42 = vmax.f32 %v286_v39, 0.0  ;;  %v671_v43 = vmax.f32 %v287_v40, 0.0  ;;  %v288_v44 = vld [vmem:[%s1662_s29 + $0x4b0] sm:$0xff]  ;;  %v289_v45 = vld [vmem:[%s1662_s29 + $0x4b8] sm:$0xff] }
  0x83   : > { %v290_v46 = vld [vmem:[%s1662_s29 + $0x4c0] sm:$0xff]  ;;  %1050 = vst [vmem:[%s1678_s16 + $0x480] sm:$0xff] %v666_v35  ;;  %1051 = vst [vmem:[%s1678_s16 + $0x488] sm:$0xff] %v667_v36  ;;  %v672_v47 = vmax.f32 %v288_v44, 0.0  ;;  %v673_v48 = vmax.f32 %v289_v45, 0.0  ;;  %v291_v50 = vld [vmem:[%s1662_s29 + $0x4c8] sm:$0xff] }
  0x84   : > { %1052 = vst [vmem:[%s1678_s16 + $0x490] sm:$0xff] %v668_v37  ;;  %v674_v49 = vmax.f32 %v290_v46, 0.0  ;;  %v292_v51 = vld [vmem:[%s1662_s29 + $0x4d0] sm:$0xff]  ;;  %v293_v52 = vld [vmem:[%s1662_s29 + $0x4d8] sm:$0xff]  ;;  %1053 = vst [vmem:[%s1678_s16 + $0x498] sm:$0xff] %v669_v41  ;;  %v675_v53 = vmax.f32 %v291_v50, 0.0 }
  0x85   : > { %1054 = vst [vmem:[%s1678_s16 + $0x4a0] sm:$0xff] %v670_v42  ;;  %1055 = vst [vmem:[%s1678_s16 + $0x4a8] sm:$0xff] %v671_v43  ;;  %v676_v54 = vmax.f32 %v292_v51, 0.0  ;;  %v677_v55 = vmax.f32 %v293_v52, 0.0  ;;  %v294_v56 = vld [vmem:[%s1662_s29 + $0x4e0] sm:$0xff]  ;;  %v295_v57 = vld [vmem:[%s1662_s29 + $0x4e8] sm:$0xff] }
  0x86   : > { %v296_v58 = vld [vmem:[%s1662_s29 + $0x4f0] sm:$0xff]  ;;  %1056 = vst [vmem:[%s1678_s16 + $0x4b0] sm:$0xff] %v672_v47  ;;  %1057 = vst [vmem:[%s1678_s16 + $0x4b8] sm:$0xff] %v673_v48  ;;  %v678_v59 = vmax.f32 %v294_v56, 0.0  ;;  %v679_v60 = vmax.f32 %v295_v57, 0.0  ;;  %v297_v62 = vld [vmem:[%s1662_s29 + $0x4f8] sm:$0xff] }
  0x87   : > { %1058 = vst [vmem:[%s1678_s16 + $0x4c0] sm:$0xff] %v674_v49  ;;  %v680_v61 = vmax.f32 %v296_v58, 0.0  ;;  %v298_v63 = vld [vmem:[%s1662_s29 + $0x500] sm:$0xff]  ;;  %v299_v0 = vld [vmem:[%s1662_s29 + $0x508] sm:$0xff]  ;;  %1059 = vst [vmem:[%s1678_s16 + $0x4c8] sm:$0xff] %v675_v53  ;;  %v681_v1 = vmax.f32 %v297_v62, 0.0 }
  0x88   : > { %1060 = vst [vmem:[%s1678_s16 + $0x4d0] sm:$0xff] %v676_v54  ;;  %1061 = vst [vmem:[%s1678_s16 + $0x4d8] sm:$0xff] %v677_v55  ;;  %v682_v2 = vmax.f32 %v298_v63, 0.0  ;;  %v683_v3 = vmax.f32 %v299_v0, 0.0  ;;  %v300_v4 = vld [vmem:[%s1662_s29 + $0x510] sm:$0xff]  ;;  %v301_v5 = vld [vmem:[%s1662_s29 + $0x518] sm:$0xff] }
  0x89   : > { %v302_v6 = vld [vmem:[%s1662_s29 + $0x520] sm:$0xff]  ;;  %1062 = vst [vmem:[%s1678_s16 + $0x4e0] sm:$0xff] %v678_v59  ;;  %1063 = vst [vmem:[%s1678_s16 + $0x4e8] sm:$0xff] %v679_v60  ;;  %v684_v7 = vmax.f32 %v300_v4, 0.0  ;;  %v685_v8 = vmax.f32 %v301_v5, 0.0  ;;  %v303_v10 = vld [vmem:[%s1662_s29 + $0x528] sm:$0xff] }
  0x8a   : > { %1064 = vst [vmem:[%s1678_s16 + $0x4f0] sm:$0xff] %v680_v61  ;;  %v686_v9 = vmax.f32 %v302_v6, 0.0  ;;  %v304_v11 = vld [vmem:[%s1662_s29 + $0x530] sm:$0xff]  ;;  %v305_v12 = vld [vmem:[%s1662_s29 + $0x538] sm:$0xff]  ;;  %1065 = vst [vmem:[%s1678_s16 + $0x4f8] sm:$0xff] %v681_v1  ;;  %v687_v13 = vmax.f32 %v303_v10, 0.0 }
  0x8b   : > { %1066 = vst [vmem:[%s1678_s16 + $0x500] sm:$0xff] %v682_v2  ;;  %1067 = vst [vmem:[%s1678_s16 + $0x508] sm:$0xff] %v683_v3  ;;  %v688_v14 = vmax.f32 %v304_v11, 0.0  ;;  %v689_v15 = vmax.f32 %v305_v12, 0.0  ;;  %v306_v16 = vld [vmem:[%s1662_s29 + $0x540] sm:$0xff]  ;;  %v307_v17 = vld [vmem:[%s1662_s29 + $0x548] sm:$0xff] }
  0x8c   : > { %v308_v18 = vld [vmem:[%s1662_s29 + $0x550] sm:$0xff]  ;;  %1068 = vst [vmem:[%s1678_s16 + $0x510] sm:$0xff] %v684_v7  ;;  %1069 = vst [vmem:[%s1678_s16 + $0x518] sm:$0xff] %v685_v8  ;;  %v690_v19 = vmax.f32 %v306_v16, 0.0  ;;  %v691_v20 = vmax.f32 %v307_v17, 0.0  ;;  %v309_v22 = vld [vmem:[%s1662_s29 + $0x558] sm:$0xff] }
  0x8d   : > { %1070 = vst [vmem:[%s1678_s16 + $0x520] sm:$0xff] %v686_v9  ;;  %v692_v21 = vmax.f32 %v308_v18, 0.0  ;;  %v310_v23 = vld [vmem:[%s1662_s29 + $0x560] sm:$0xff]  ;;  %v311_v24 = vld [vmem:[%s1662_s29 + $0x568] sm:$0xff]  ;;  %1071 = vst [vmem:[%s1678_s16 + $0x528] sm:$0xff] %v687_v13  ;;  %v693_v25 = vmax.f32 %v309_v22, 0.0 }
  0x8e   : > { %1072 = vst [vmem:[%s1678_s16 + $0x530] sm:$0xff] %v688_v14  ;;  %1073 = vst [vmem:[%s1678_s16 + $0x538] sm:$0xff] %v689_v15  ;;  %v694_v26 = vmax.f32 %v310_v23, 0.0  ;;  %v695_v27 = vmax.f32 %v311_v24, 0.0  ;;  %v312_v28 = vld [vmem:[%s1662_s29 + $0x570] sm:$0xff]  ;;  %v313_v29 = vld [vmem:[%s1662_s29 + $0x578] sm:$0xff] }
  0x8f   : > { %v314_v30 = vld [vmem:[%s1662_s29 + $0x580] sm:$0xff]  ;;  %1074 = vst [vmem:[%s1678_s16 + $0x540] sm:$0xff] %v690_v19  ;;  %1075 = vst [vmem:[%s1678_s16 + $0x548] sm:$0xff] %v691_v20  ;;  %v696_v31 = vmax.f32 %v312_v28, 0.0  ;;  %v697_v32 = vmax.f32 %v313_v29, 0.0  ;;  %v315_v34 = vld [vmem:[%s1662_s29 + $0x588] sm:$0xff] }
  0x90   : > { %1076 = vst [vmem:[%s1678_s16 + $0x550] sm:$0xff] %v692_v21  ;;  %v698_v33 = vmax.f32 %v314_v30, 0.0  ;;  %v316_v35 = vld [vmem:[%s1662_s29 + $0x590] sm:$0xff]  ;;  %v317_v36 = vld [vmem:[%s1662_s29 + $0x598] sm:$0xff]  ;;  %1077 = vst [vmem:[%s1678_s16 + $0x558] sm:$0xff] %v693_v25  ;;  %v699_v37 = vmax.f32 %v315_v34, 0.0 }
  0x91   : > { %1078 = vst [vmem:[%s1678_s16 + $0x560] sm:$0xff] %v694_v26  ;;  %1079 = vst [vmem:[%s1678_s16 + $0x568] sm:$0xff] %v695_v27  ;;  %v700_v38 = vmax.f32 %v316_v35, 0.0  ;;  %v701_v39 = vmax.f32 %v317_v36, 0.0  ;;  %v318_v40 = vld [vmem:[%s1662_s29 + $0x5a0] sm:$0xff]  ;;  %v319_v41 = vld [vmem:[%s1662_s29 + $0x5a8] sm:$0xff] }
  0x92   : > { %v320_v42 = vld [vmem:[%s1662_s29 + $0x5b0] sm:$0xff]  ;;  %1080 = vst [vmem:[%s1678_s16 + $0x570] sm:$0xff] %v696_v31  ;;  %1081 = vst [vmem:[%s1678_s16 + $0x578] sm:$0xff] %v697_v32  ;;  %v702_v43 = vmax.f32 %v318_v40, 0.0  ;;  %v703_v44 = vmax.f32 %v319_v41, 0.0  ;;  %v321_v46 = vld [vmem:[%s1662_s29 + $0x5b8] sm:$0xff] }
  0x93   : > { %1082 = vst [vmem:[%s1678_s16 + $0x580] sm:$0xff] %v698_v33  ;;  %v704_v45 = vmax.f32 %v320_v42, 0.0  ;;  %v322_v47 = vld [vmem:[%s1662_s29 + $0x5c0] sm:$0xff]  ;;  %v323_v48 = vld [vmem:[%s1662_s29 + $0x5c8] sm:$0xff]  ;;  %1083 = vst [vmem:[%s1678_s16 + $0x588] sm:$0xff] %v699_v37  ;;  %v705_v49 = vmax.f32 %v321_v46, 0.0 }
  0x94   : > { %1084 = vst [vmem:[%s1678_s16 + $0x590] sm:$0xff] %v700_v38  ;;  %1085 = vst [vmem:[%s1678_s16 + $0x598] sm:$0xff] %v701_v39  ;;  %v706_v50 = vmax.f32 %v322_v47, 0.0  ;;  %v707_v51 = vmax.f32 %v323_v48, 0.0  ;;  %v324_v52 = vld [vmem:[%s1662_s29 + $0x5d0] sm:$0xff]  ;;  %v325_v53 = vld [vmem:[%s1662_s29 + $0x5d8] sm:$0xff] }
  0x95   : > { %v326_v54 = vld [vmem:[%s1662_s29 + $0x5e0] sm:$0xff]  ;;  %1086 = vst [vmem:[%s1678_s16 + $0x5a0] sm:$0xff] %v702_v43  ;;  %1087 = vst [vmem:[%s1678_s16 + $0x5a8] sm:$0xff] %v703_v44  ;;  %v708_v55 = vmax.f32 %v324_v52, 0.0  ;;  %v709_v56 = vmax.f32 %v325_v53, 0.0  ;;  %v327_v58 = vld [vmem:[%s1662_s29 + $0x5e8] sm:$0xff] }
  0x96   : > { %1088 = vst [vmem:[%s1678_s16 + $0x5b0] sm:$0xff] %v704_v45  ;;  %v710_v57 = vmax.f32 %v326_v54, 0.0  ;;  %v328_v59 = vld [vmem:[%s1662_s29 + $0x5f0] sm:$0xff]  ;;  %v329_v60 = vld [vmem:[%s1662_s29 + $0x5f8] sm:$0xff]  ;;  %1089 = vst [vmem:[%s1678_s16 + $0x5b8] sm:$0xff] %v705_v49  ;;  %v711_v61 = vmax.f32 %v327_v58, 0.0 }
  0x97   : > { %1090 = vst [vmem:[%s1678_s16 + $0x5c0] sm:$0xff] %v706_v50  ;;  %1091 = vst [vmem:[%s1678_s16 + $0x5c8] sm:$0xff] %v707_v51  ;;  %v712_v62 = vmax.f32 %v328_v59, 0.0  ;;  %v713_v63 = vmax.f32 %v329_v60, 0.0  ;;  %v330_v0 = vld [vmem:[%s1662_s29 + $0x600] sm:$0xff]  ;;  %v331_v1 = vld [vmem:[%s1662_s29 + $0x608] sm:$0xff] }
  0x98   : > { %v332_v2 = vld [vmem:[%s1662_s29 + $0x610] sm:$0xff]  ;;  %1092 = vst [vmem:[%s1678_s16 + $0x5d0] sm:$0xff] %v708_v55  ;;  %1093 = vst [vmem:[%s1678_s16 + $0x5d8] sm:$0xff] %v709_v56  ;;  %v714_v3 = vmax.f32 %v330_v0, 0.0  ;;  %v715_v4 = vmax.f32 %v331_v1, 0.0  ;;  %v333_v6 = vld [vmem:[%s1662_s29 + $0x618] sm:$0xff] }
  0x99   : > { %1094 = vst [vmem:[%s1678_s16 + $0x5e0] sm:$0xff] %v710_v57  ;;  %v716_v5 = vmax.f32 %v332_v2, 0.0  ;;  %v334_v7 = vld [vmem:[%s1662_s29 + $0x620] sm:$0xff]  ;;  %v335_v8 = vld [vmem:[%s1662_s29 + $0x628] sm:$0xff]  ;;  %1095 = vst [vmem:[%s1678_s16 + $0x5e8] sm:$0xff] %v711_v61  ;;  %v717_v9 = vmax.f32 %v333_v6, 0.0 }
  0x9a   : > { %1096 = vst [vmem:[%s1678_s16 + $0x5f0] sm:$0xff] %v712_v62  ;;  %1097 = vst [vmem:[%s1678_s16 + $0x5f8] sm:$0xff] %v713_v63  ;;  %v718_v10 = vmax.f32 %v334_v7, 0.0  ;;  %v719_v11 = vmax.f32 %v335_v8, 0.0  ;;  %v336_v12 = vld [vmem:[%s1662_s29 + $0x630] sm:$0xff]  ;;  %v337_v13 = vld [vmem:[%s1662_s29 + $0x638] sm:$0xff] }
  0x9b   : > { %v338_v14 = vld [vmem:[%s1662_s29 + $0x640] sm:$0xff]  ;;  %1098 = vst [vmem:[%s1678_s16 + $0x600] sm:$0xff] %v714_v3  ;;  %1099 = vst [vmem:[%s1678_s16 + $0x608] sm:$0xff] %v715_v4  ;;  %v720_v15 = vmax.f32 %v336_v12, 0.0  ;;  %v721_v16 = vmax.f32 %v337_v13, 0.0  ;;  %v339_v18 = vld [vmem:[%s1662_s29 + $0x648] sm:$0xff] }
  0x9c   : > { %1100 = vst [vmem:[%s1678_s16 + $0x610] sm:$0xff] %v716_v5  ;;  %v722_v17 = vmax.f32 %v338_v14, 0.0  ;;  %v340_v19 = vld [vmem:[%s1662_s29 + $0x650] sm:$0xff]  ;;  %v341_v20 = vld [vmem:[%s1662_s29 + $0x658] sm:$0xff]  ;;  %1101 = vst [vmem:[%s1678_s16 + $0x618] sm:$0xff] %v717_v9  ;;  %v723_v21 = vmax.f32 %v339_v18, 0.0 }
  0x9d   : > { %1102 = vst [vmem:[%s1678_s16 + $0x620] sm:$0xff] %v718_v10  ;;  %1103 = vst [vmem:[%s1678_s16 + $0x628] sm:$0xff] %v719_v11  ;;  %v724_v22 = vmax.f32 %v340_v19, 0.0  ;;  %v725_v23 = vmax.f32 %v341_v20, 0.0  ;;  %v342_v24 = vld [vmem:[%s1662_s29 + $0x660] sm:$0xff]  ;;  %v343_v25 = vld [vmem:[%s1662_s29 + $0x668] sm:$0xff] }
  0x9e   : > { %v344_v26 = vld [vmem:[%s1662_s29 + $0x670] sm:$0xff]  ;;  %1104 = vst [vmem:[%s1678_s16 + $0x630] sm:$0xff] %v720_v15  ;;  %1105 = vst [vmem:[%s1678_s16 + $0x638] sm:$0xff] %v721_v16  ;;  %v726_v27 = vmax.f32 %v342_v24, 0.0  ;;  %v727_v28 = vmax.f32 %v343_v25, 0.0  ;;  %v345_v30 = vld [vmem:[%s1662_s29 + $0x678] sm:$0xff] }
  0x9f   : > { %1106 = vst [vmem:[%s1678_s16 + $0x640] sm:$0xff] %v722_v17  ;;  %v728_v29 = vmax.f32 %v344_v26, 0.0  ;;  %v346_v31 = vld [vmem:[%s1662_s29 + $0x680] sm:$0xff]  ;;  %v347_v32 = vld [vmem:[%s1662_s29 + $0x688] sm:$0xff]  ;;  %1107 = vst [vmem:[%s1678_s16 + $0x648] sm:$0xff] %v723_v21  ;;  %v729_v33 = vmax.f32 %v345_v30, 0.0 }
  0xa0   : > { %1108 = vst [vmem:[%s1678_s16 + $0x650] sm:$0xff] %v724_v22  ;;  %1109 = vst [vmem:[%s1678_s16 + $0x658] sm:$0xff] %v725_v23  ;;  %v730_v34 = vmax.f32 %v346_v31, 0.0  ;;  %v731_v35 = vmax.f32 %v347_v32, 0.0  ;;  %v348_v36 = vld [vmem:[%s1662_s29 + $0x690] sm:$0xff]  ;;  %v349_v37 = vld [vmem:[%s1662_s29 + $0x698] sm:$0xff] }
  0xa1   : > { %v350_v38 = vld [vmem:[%s1662_s29 + $0x6a0] sm:$0xff]  ;;  %1110 = vst [vmem:[%s1678_s16 + $0x660] sm:$0xff] %v726_v27  ;;  %1111 = vst [vmem:[%s1678_s16 + $0x668] sm:$0xff] %v727_v28  ;;  %v732_v39 = vmax.f32 %v348_v36, 0.0  ;;  %v733_v40 = vmax.f32 %v349_v37, 0.0  ;;  %v351_v42 = vld [vmem:[%s1662_s29 + $0x6a8] sm:$0xff] }
  0xa2   : > { %1112 = vst [vmem:[%s1678_s16 + $0x670] sm:$0xff] %v728_v29  ;;  %v734_v41 = vmax.f32 %v350_v38, 0.0  ;;  %v352_v43 = vld [vmem:[%s1662_s29 + $0x6b0] sm:$0xff]  ;;  %v353_v44 = vld [vmem:[%s1662_s29 + $0x6b8] sm:$0xff]  ;;  %1113 = vst [vmem:[%s1678_s16 + $0x678] sm:$0xff] %v729_v33  ;;  %v735_v45 = vmax.f32 %v351_v42, 0.0 }
  0xa3   : > { %1114 = vst [vmem:[%s1678_s16 + $0x680] sm:$0xff] %v730_v34  ;;  %1115 = vst [vmem:[%s1678_s16 + $0x688] sm:$0xff] %v731_v35  ;;  %v736_v46 = vmax.f32 %v352_v43, 0.0  ;;  %v737_v47 = vmax.f32 %v353_v44, 0.0  ;;  %v354_v48 = vld [vmem:[%s1662_s29 + $0x6c0] sm:$0xff]  ;;  %v355_v49 = vld [vmem:[%s1662_s29 + $0x6c8] sm:$0xff] }
  0xa4   : > { %v356_v50 = vld [vmem:[%s1662_s29 + $0x6d0] sm:$0xff]  ;;  %1116 = vst [vmem:[%s1678_s16 + $0x690] sm:$0xff] %v732_v39  ;;  %1117 = vst [vmem:[%s1678_s16 + $0x698] sm:$0xff] %v733_v40  ;;  %v738_v51 = vmax.f32 %v354_v48, 0.0  ;;  %v739_v52 = vmax.f32 %v355_v49, 0.0  ;;  %v357_v54 = vld [vmem:[%s1662_s29 + $0x6d8] sm:$0xff] }
  0xa5   : > { %1118 = vst [vmem:[%s1678_s16 + $0x6a0] sm:$0xff] %v734_v41  ;;  %v740_v53 = vmax.f32 %v356_v50, 0.0  ;;  %v358_v55 = vld [vmem:[%s1662_s29 + $0x6e0] sm:$0xff]  ;;  %v359_v56 = vld [vmem:[%s1662_s29 + $0x6e8] sm:$0xff]  ;;  %1119 = vst [vmem:[%s1678_s16 + $0x6a8] sm:$0xff] %v735_v45  ;;  %v741_v57 = vmax.f32 %v357_v54, 0.0 }
  0xa6   : > { %1120 = vst [vmem:[%s1678_s16 + $0x6b0] sm:$0xff] %v736_v46  ;;  %1121 = vst [vmem:[%s1678_s16 + $0x6b8] sm:$0xff] %v737_v47  ;;  %v742_v58 = vmax.f32 %v358_v55, 0.0  ;;  %v743_v59 = vmax.f32 %v359_v56, 0.0  ;;  %v360_v60 = vld [vmem:[%s1662_s29 + $0x6f0] sm:$0xff]  ;;  %v361_v61 = vld [vmem:[%s1662_s29 + $0x6f8] sm:$0xff] }
  0xa7   : > { %v362_v62 = vld [vmem:[%s1662_s29 + $0x700] sm:$0xff]  ;;  %1122 = vst [vmem:[%s1678_s16 + $0x6c0] sm:$0xff] %v738_v51  ;;  %1123 = vst [vmem:[%s1678_s16 + $0x6c8] sm:$0xff] %v739_v52  ;;  %v744_v63 = vmax.f32 %v360_v60, 0.0  ;;  %v745_v0 = vmax.f32 %v361_v61, 0.0  ;;  %v363_v2 = vld [vmem:[%s1662_s29 + $0x708] sm:$0xff] }
  0xa8   : > { %1124 = vst [vmem:[%s1678_s16 + $0x6d0] sm:$0xff] %v740_v53  ;;  %v746_v1 = vmax.f32 %v362_v62, 0.0  ;;  %v364_v3 = vld [vmem:[%s1662_s29 + $0x710] sm:$0xff]  ;;  %v365_v4 = vld [vmem:[%s1662_s29 + $0x718] sm:$0xff]  ;;  %1125 = vst [vmem:[%s1678_s16 + $0x6d8] sm:$0xff] %v741_v57  ;;  %v747_v5 = vmax.f32 %v363_v2, 0.0 }
  0xa9   : > { %1126 = vst [vmem:[%s1678_s16 + $0x6e0] sm:$0xff] %v742_v58  ;;  %1127 = vst [vmem:[%s1678_s16 + $0x6e8] sm:$0xff] %v743_v59  ;;  %v748_v6 = vmax.f32 %v364_v3, 0.0  ;;  %v749_v7 = vmax.f32 %v365_v4, 0.0  ;;  %v366_v8 = vld [vmem:[%s1662_s29 + $0x720] sm:$0xff]  ;;  %v367_v9 = vld [vmem:[%s1662_s29 + $0x728] sm:$0xff] }
  0xaa   : > { %v368_v10 = vld [vmem:[%s1662_s29 + $0x730] sm:$0xff]  ;;  %1128 = vst [vmem:[%s1678_s16 + $0x6f0] sm:$0xff] %v744_v63  ;;  %1129 = vst [vmem:[%s1678_s16 + $0x6f8] sm:$0xff] %v745_v0  ;;  %v750_v11 = vmax.f32 %v366_v8, 0.0  ;;  %v751_v12 = vmax.f32 %v367_v9, 0.0  ;;  %v369_v14 = vld [vmem:[%s1662_s29 + $0x738] sm:$0xff] }
  0xab   : > { %1130 = vst [vmem:[%s1678_s16 + $0x700] sm:$0xff] %v746_v1  ;;  %v752_v13 = vmax.f32 %v368_v10, 0.0  ;;  %v370_v15 = vld [vmem:[%s1662_s29 + $0x740] sm:$0xff]  ;;  %v371_v16 = vld [vmem:[%s1662_s29 + $0x748] sm:$0xff]  ;;  %1131 = vst [vmem:[%s1678_s16 + $0x708] sm:$0xff] %v747_v5  ;;  %v753_v17 = vmax.f32 %v369_v14, 0.0 }
  0xac   : > { %1132 = vst [vmem:[%s1678_s16 + $0x710] sm:$0xff] %v748_v6  ;;  %1133 = vst [vmem:[%s1678_s16 + $0x718] sm:$0xff] %v749_v7  ;;  %v754_v18 = vmax.f32 %v370_v15, 0.0  ;;  %v755_v19 = vmax.f32 %v371_v16, 0.0  ;;  %v372_v20 = vld [vmem:[%s1662_s29 + $0x750] sm:$0xff]  ;;  %v373_v21 = vld [vmem:[%s1662_s29 + $0x758] sm:$0xff] }
  0xad   : > { %v374_v22 = vld [vmem:[%s1662_s29 + $0x760] sm:$0xff]  ;;  %1134 = vst [vmem:[%s1678_s16 + $0x720] sm:$0xff] %v750_v11  ;;  %1135 = vst [vmem:[%s1678_s16 + $0x728] sm:$0xff] %v751_v12  ;;  %v756_v23 = vmax.f32 %v372_v20, 0.0  ;;  %v757_v24 = vmax.f32 %v373_v21, 0.0  ;;  %v375_v26 = vld [vmem:[%s1662_s29 + $0x768] sm:$0xff] }
  0xae   : > { %1136 = vst [vmem:[%s1678_s16 + $0x730] sm:$0xff] %v752_v13  ;;  %v758_v25 = vmax.f32 %v374_v22, 0.0  ;;  %v376_v27 = vld [vmem:[%s1662_s29 + $0x770] sm:$0xff]  ;;  %v377_v28 = vld [vmem:[%s1662_s29 + $0x778] sm:$0xff]  ;;  %1137 = vst [vmem:[%s1678_s16 + $0x738] sm:$0xff] %v753_v17  ;;  %v759_v29 = vmax.f32 %v375_v26, 0.0 }
  0xaf   : > { %1138 = vst [vmem:[%s1678_s16 + $0x740] sm:$0xff] %v754_v18  ;;  %1139 = vst [vmem:[%s1678_s16 + $0x748] sm:$0xff] %v755_v19  ;;  %v760_v30 = vmax.f32 %v376_v27, 0.0  ;;  %v761_v31 = vmax.f32 %v377_v28, 0.0  ;;  %v378_v32 = vld [vmem:[%s1662_s29 + $0x780] sm:$0xff]  ;;  %v379_v33 = vld [vmem:[%s1662_s29 + $0x788] sm:$0xff] }
  0xb0   : > { %v380_v34 = vld [vmem:[%s1662_s29 + $0x790] sm:$0xff]  ;;  %1140 = vst [vmem:[%s1678_s16 + $0x750] sm:$0xff] %v756_v23  ;;  %1141 = vst [vmem:[%s1678_s16 + $0x758] sm:$0xff] %v757_v24  ;;  %v762_v35 = vmax.f32 %v378_v32, 0.0  ;;  %v763_v36 = vmax.f32 %v379_v33, 0.0  ;;  %v381_v38 = vld [vmem:[%s1662_s29 + $0x798] sm:$0xff] }
  0xb1   : > { %1142 = vst [vmem:[%s1678_s16 + $0x760] sm:$0xff] %v758_v25  ;;  %v764_v37 = vmax.f32 %v380_v34, 0.0  ;;  %v382_v39 = vld [vmem:[%s1662_s29 + $0x7a0] sm:$0xff]  ;;  %v383_v40 = vld [vmem:[%s1662_s29 + $0x7a8] sm:$0xff]  ;;  %1143 = vst [vmem:[%s1678_s16 + $0x768] sm:$0xff] %v759_v29  ;;  %v765_v41 = vmax.f32 %v381_v38, 0.0 }
  0xb2   : > { %1144 = vst [vmem:[%s1678_s16 + $0x770] sm:$0xff] %v760_v30  ;;  %1145 = vst [vmem:[%s1678_s16 + $0x778] sm:$0xff] %v761_v31  ;;  %v766_v42 = vmax.f32 %v382_v39, 0.0  ;;  %v767_v43 = vmax.f32 %v383_v40, 0.0  ;;  %v384_v44 = vld [vmem:[%s1662_s29 + $0x7b0] sm:$0xff]  ;;  %v385_v45 = vld [vmem:[%s1662_s29 + $0x7b8] sm:$0xff] }
  0xb3   : > { %v386_v46 = vld [vmem:[%s1662_s29 + $0x7c0] sm:$0xff]  ;;  %1146 = vst [vmem:[%s1678_s16 + $0x780] sm:$0xff] %v762_v35  ;;  %1147 = vst [vmem:[%s1678_s16 + $0x788] sm:$0xff] %v763_v36  ;;  %v768_v47 = vmax.f32 %v384_v44, 0.0  ;;  %v769_v48 = vmax.f32 %v385_v45, 0.0  ;;  %v387_v50 = vld [vmem:[%s1662_s29 + $0x7c8] sm:$0xff] }
  0xb4   : > { %1148 = vst [vmem:[%s1678_s16 + $0x790] sm:$0xff] %v764_v37  ;;  %v770_v49 = vmax.f32 %v386_v46, 0.0  ;;  %v388_v51 = vld [vmem:[%s1662_s29 + $0x7d0] sm:$0xff]  ;;  %v389_v52 = vld [vmem:[%s1662_s29 + $0x7d8] sm:$0xff]  ;;  %1149 = vst [vmem:[%s1678_s16 + $0x798] sm:$0xff] %v765_v41  ;;  %v771_v53 = vmax.f32 %v387_v50, 0.0 }
  0xb5   : > { %1150 = vst [vmem:[%s1678_s16 + $0x7a0] sm:$0xff] %v766_v42  ;;  %1151 = vst [vmem:[%s1678_s16 + $0x7a8] sm:$0xff] %v767_v43  ;;  %v772_v54 = vmax.f32 %v388_v51, 0.0  ;;  %v773_v55 = vmax.f32 %v389_v52, 0.0  ;;  %v390_v56 = vld [vmem:[%s1662_s29 + $0x7e0] sm:$0xff]  ;;  %v391_v57 = vld [vmem:[%s1662_s29 + $0x7e8] sm:$0xff] }
  0xb6   : > { %v392_v58 = vld [vmem:[%s1662_s29 + $0x7f0] sm:$0xff]  ;;  %1152 = vst [vmem:[%s1678_s16 + $0x7b0] sm:$0xff] %v768_v47  ;;  %1153 = vst [vmem:[%s1678_s16 + $0x7b8] sm:$0xff] %v769_v48  ;;  %v774_v59 = vmax.f32 %v390_v56, 0.0  ;;  %v775_v60 = vmax.f32 %v391_v57, 0.0  ;;  %v393_v62 = vld [vmem:[%s1662_s29 + $0x7f8] sm:$0xff] }
  0xb7   : > { %1154 = vst [vmem:[%s1678_s16 + $0x7c0] sm:$0xff] %v770_v49  ;;  %v776_v61 = vmax.f32 %v392_v58, 0.0  ;;  %v394_v63 = vld [vmem:[%s1662_s29 + $0x800] sm:$0xff]  ;;  %v395_v0 = vld [vmem:[%s1662_s29 + $0x808] sm:$0xff]  ;;  %1155 = vst [vmem:[%s1678_s16 + $0x7c8] sm:$0xff] %v771_v53  ;;  %v777_v1 = vmax.f32 %v393_v62, 0.0 }
  0xb8   : > { %1156 = vst [vmem:[%s1678_s16 + $0x7d0] sm:$0xff] %v772_v54  ;;  %1157 = vst [vmem:[%s1678_s16 + $0x7d8] sm:$0xff] %v773_v55  ;;  %v778_v2 = vmax.f32 %v394_v63, 0.0  ;;  %v779_v3 = vmax.f32 %v395_v0, 0.0  ;;  %v396_v4 = vld [vmem:[%s1662_s29 + $0x810] sm:$0xff]  ;;  %v397_v5 = vld [vmem:[%s1662_s29 + $0x818] sm:$0xff] }
  0xb9   : > { %v398_v6 = vld [vmem:[%s1662_s29 + $0x820] sm:$0xff]  ;;  %1158 = vst [vmem:[%s1678_s16 + $0x7e0] sm:$0xff] %v774_v59  ;;  %1159 = vst [vmem:[%s1678_s16 + $0x7e8] sm:$0xff] %v775_v60  ;;  %v780_v7 = vmax.f32 %v396_v4, 0.0  ;;  %v781_v8 = vmax.f32 %v397_v5, 0.0  ;;  %v399_v10 = vld [vmem:[%s1662_s29 + $0x828] sm:$0xff] }
  0xba   : > { %1160 = vst [vmem:[%s1678_s16 + $0x7f0] sm:$0xff] %v776_v61  ;;  %v782_v9 = vmax.f32 %v398_v6, 0.0  ;;  %v400_v11 = vld [vmem:[%s1662_s29 + $0x830] sm:$0xff]  ;;  %v401_v12 = vld [vmem:[%s1662_s29 + $0x838] sm:$0xff]  ;;  %1161 = vst [vmem:[%s1678_s16 + $0x7f8] sm:$0xff] %v777_v1  ;;  %v783_v13 = vmax.f32 %v399_v10, 0.0 }
  0xbb   : > { %1162 = vst [vmem:[%s1678_s16 + $0x800] sm:$0xff] %v778_v2  ;;  %1163 = vst [vmem:[%s1678_s16 + $0x808] sm:$0xff] %v779_v3  ;;  %v784_v14 = vmax.f32 %v400_v11, 0.0  ;;  %v785_v15 = vmax.f32 %v401_v12, 0.0  ;;  %v402_v16 = vld [vmem:[%s1662_s29 + $0x840] sm:$0xff]  ;;  %v403_v17 = vld [vmem:[%s1662_s29 + $0x848] sm:$0xff] }
  0xbc   : > { %v404_v18 = vld [vmem:[%s1662_s29 + $0x850] sm:$0xff]  ;;  %1164 = vst [vmem:[%s1678_s16 + $0x810] sm:$0xff] %v780_v7  ;;  %1165 = vst [vmem:[%s1678_s16 + $0x818] sm:$0xff] %v781_v8  ;;  %v786_v19 = vmax.f32 %v402_v16, 0.0  ;;  %v787_v20 = vmax.f32 %v403_v17, 0.0  ;;  %v405_v22 = vld [vmem:[%s1662_s29 + $0x858] sm:$0xff] }
  0xbd   : > { %1166 = vst [vmem:[%s1678_s16 + $0x820] sm:$0xff] %v782_v9  ;;  %v788_v21 = vmax.f32 %v404_v18, 0.0  ;;  %v406_v23 = vld [vmem:[%s1662_s29 + $0x860] sm:$0xff]  ;;  %v407_v24 = vld [vmem:[%s1662_s29 + $0x868] sm:$0xff]  ;;  %1167 = vst [vmem:[%s1678_s16 + $0x828] sm:$0xff] %v783_v13  ;;  %v789_v25 = vmax.f32 %v405_v22, 0.0 }
  0xbe   : > { %1168 = vst [vmem:[%s1678_s16 + $0x830] sm:$0xff] %v784_v14  ;;  %1169 = vst [vmem:[%s1678_s16 + $0x838] sm:$0xff] %v785_v15  ;;  %v790_v26 = vmax.f32 %v406_v23, 0.0  ;;  %v791_v27 = vmax.f32 %v407_v24, 0.0  ;;  %v408_v28 = vld [vmem:[%s1662_s29 + $0x870] sm:$0xff]  ;;  %v409_v29 = vld [vmem:[%s1662_s29 + $0x878] sm:$0xff] }
  0xbf   : > { %v410_v30 = vld [vmem:[%s1662_s29 + $0x880] sm:$0xff]  ;;  %1170 = vst [vmem:[%s1678_s16 + $0x840] sm:$0xff] %v786_v19  ;;  %1171 = vst [vmem:[%s1678_s16 + $0x848] sm:$0xff] %v787_v20  ;;  %v792_v31 = vmax.f32 %v408_v28, 0.0  ;;  %v793_v32 = vmax.f32 %v409_v29, 0.0  ;;  %v411_v34 = vld [vmem:[%s1662_s29 + $0x888] sm:$0xff] }
  0xc0   : > { %1172 = vst [vmem:[%s1678_s16 + $0x850] sm:$0xff] %v788_v21  ;;  %v794_v33 = vmax.f32 %v410_v30, 0.0  ;;  %v412_v35 = vld [vmem:[%s1662_s29 + $0x890] sm:$0xff]  ;;  %v413_v36 = vld [vmem:[%s1662_s29 + $0x898] sm:$0xff]  ;;  %1173 = vst [vmem:[%s1678_s16 + $0x858] sm:$0xff] %v789_v25  ;;  %v795_v37 = vmax.f32 %v411_v34, 0.0 }
  0xc1   : > { %1174 = vst [vmem:[%s1678_s16 + $0x860] sm:$0xff] %v790_v26  ;;  %1175 = vst [vmem:[%s1678_s16 + $0x868] sm:$0xff] %v791_v27  ;;  %v796_v38 = vmax.f32 %v412_v35, 0.0  ;;  %v797_v39 = vmax.f32 %v413_v36, 0.0  ;;  %v414_v40 = vld [vmem:[%s1662_s29 + $0x8a0] sm:$0xff]  ;;  %v415_v41 = vld [vmem:[%s1662_s29 + $0x8a8] sm:$0xff] }
  0xc2   : > { %v416_v42 = vld [vmem:[%s1662_s29 + $0x8b0] sm:$0xff]  ;;  %1176 = vst [vmem:[%s1678_s16 + $0x870] sm:$0xff] %v792_v31  ;;  %1177 = vst [vmem:[%s1678_s16 + $0x878] sm:$0xff] %v793_v32  ;;  %v798_v43 = vmax.f32 %v414_v40, 0.0  ;;  %v799_v44 = vmax.f32 %v415_v41, 0.0  ;;  %v417_v46 = vld [vmem:[%s1662_s29 + $0x8b8] sm:$0xff] }
  0xc3   : > { %1178 = vst [vmem:[%s1678_s16 + $0x880] sm:$0xff] %v794_v33  ;;  %v800_v45 = vmax.f32 %v416_v42, 0.0  ;;  %v418_v47 = vld [vmem:[%s1662_s29 + $0x8c0] sm:$0xff]  ;;  %v419_v48 = vld [vmem:[%s1662_s29 + $0x8c8] sm:$0xff]  ;;  %1179 = vst [vmem:[%s1678_s16 + $0x888] sm:$0xff] %v795_v37  ;;  %v801_v49 = vmax.f32 %v417_v46, 0.0 }
  0xc4   : > { %1180 = vst [vmem:[%s1678_s16 + $0x890] sm:$0xff] %v796_v38  ;;  %1181 = vst [vmem:[%s1678_s16 + $0x898] sm:$0xff] %v797_v39  ;;  %v802_v50 = vmax.f32 %v418_v47, 0.0  ;;  %v803_v51 = vmax.f32 %v419_v48, 0.0  ;;  %v420_v52 = vld [vmem:[%s1662_s29 + $0x8d0] sm:$0xff]  ;;  %v421_v53 = vld [vmem:[%s1662_s29 + $0x8d8] sm:$0xff] }
  0xc5   : > { %v422_v54 = vld [vmem:[%s1662_s29 + $0x8e0] sm:$0xff]  ;;  %1182 = vst [vmem:[%s1678_s16 + $0x8a0] sm:$0xff] %v798_v43  ;;  %1183 = vst [vmem:[%s1678_s16 + $0x8a8] sm:$0xff] %v799_v44  ;;  %v804_v55 = vmax.f32 %v420_v52, 0.0  ;;  %v805_v56 = vmax.f32 %v421_v53, 0.0  ;;  %v423_v58 = vld [vmem:[%s1662_s29 + $0x8e8] sm:$0xff] }
  0xc6   : > { %1184 = vst [vmem:[%s1678_s16 + $0x8b0] sm:$0xff] %v800_v45  ;;  %v806_v57 = vmax.f32 %v422_v54, 0.0  ;;  %v424_v59 = vld [vmem:[%s1662_s29 + $0x8f0] sm:$0xff]  ;;  %v425_v60 = vld [vmem:[%s1662_s29 + $0x8f8] sm:$0xff]  ;;  %1185 = vst [vmem:[%s1678_s16 + $0x8b8] sm:$0xff] %v801_v49  ;;  %v807_v61 = vmax.f32 %v423_v58, 0.0 }
  0xc7   : > { %1186 = vst [vmem:[%s1678_s16 + $0x8c0] sm:$0xff] %v802_v50  ;;  %1187 = vst [vmem:[%s1678_s16 + $0x8c8] sm:$0xff] %v803_v51  ;;  %v808_v62 = vmax.f32 %v424_v59, 0.0  ;;  %v809_v63 = vmax.f32 %v425_v60, 0.0  ;;  %v426_v0 = vld [vmem:[%s1662_s29 + $0x900] sm:$0xff]  ;;  %v427_v1 = vld [vmem:[%s1662_s29 + $0x908] sm:$0xff] }
  0xc8   : > { %v428_v2 = vld [vmem:[%s1662_s29 + $0x910] sm:$0xff]  ;;  %1188 = vst [vmem:[%s1678_s16 + $0x8d0] sm:$0xff] %v804_v55  ;;  %1189 = vst [vmem:[%s1678_s16 + $0x8d8] sm:$0xff] %v805_v56  ;;  %v810_v3 = vmax.f32 %v426_v0, 0.0  ;;  %v811_v4 = vmax.f32 %v427_v1, 0.0  ;;  %v429_v6 = vld [vmem:[%s1662_s29 + $0x918] sm:$0xff] }
  0xc9   : > { %1190 = vst [vmem:[%s1678_s16 + $0x8e0] sm:$0xff] %v806_v57  ;;  %v812_v5 = vmax.f32 %v428_v2, 0.0  ;;  %v430_v7 = vld [vmem:[%s1662_s29 + $0x920] sm:$0xff]  ;;  %v431_v8 = vld [vmem:[%s1662_s29 + $0x928] sm:$0xff]  ;;  %1191 = vst [vmem:[%s1678_s16 + $0x8e8] sm:$0xff] %v807_v61  ;;  %v813_v9 = vmax.f32 %v429_v6, 0.0 }
  0xca   : > { %1192 = vst [vmem:[%s1678_s16 + $0x8f0] sm:$0xff] %v808_v62  ;;  %1193 = vst [vmem:[%s1678_s16 + $0x8f8] sm:$0xff] %v809_v63  ;;  %v814_v10 = vmax.f32 %v430_v7, 0.0  ;;  %v815_v11 = vmax.f32 %v431_v8, 0.0  ;;  %v432_v12 = vld [vmem:[%s1662_s29 + $0x930] sm:$0xff]  ;;  %v433_v13 = vld [vmem:[%s1662_s29 + $0x938] sm:$0xff] }
  0xcb   : > { %v434_v14 = vld [vmem:[%s1662_s29 + $0x940] sm:$0xff]  ;;  %1194 = vst [vmem:[%s1678_s16 + $0x900] sm:$0xff] %v810_v3  ;;  %1195 = vst [vmem:[%s1678_s16 + $0x908] sm:$0xff] %v811_v4  ;;  %v816_v15 = vmax.f32 %v432_v12, 0.0  ;;  %v817_v16 = vmax.f32 %v433_v13, 0.0  ;;  %v435_v18 = vld [vmem:[%s1662_s29 + $0x948] sm:$0xff] }
  0xcc   : > { %1196 = vst [vmem:[%s1678_s16 + $0x910] sm:$0xff] %v812_v5  ;;  %v818_v17 = vmax.f32 %v434_v14, 0.0  ;;  %v436_v19 = vld [vmem:[%s1662_s29 + $0x950] sm:$0xff]  ;;  %v437_v20 = vld [vmem:[%s1662_s29 + $0x958] sm:$0xff]  ;;  %1197 = vst [vmem:[%s1678_s16 + $0x918] sm:$0xff] %v813_v9  ;;  %v819_v21 = vmax.f32 %v435_v18, 0.0 }
  0xcd   : > { %1198 = vst [vmem:[%s1678_s16 + $0x920] sm:$0xff] %v814_v10  ;;  %1199 = vst [vmem:[%s1678_s16 + $0x928] sm:$0xff] %v815_v11  ;;  %v820_v22 = vmax.f32 %v436_v19, 0.0  ;;  %v821_v23 = vmax.f32 %v437_v20, 0.0  ;;  %v438_v24 = vld [vmem:[%s1662_s29 + $0x960] sm:$0xff]  ;;  %v439_v25 = vld [vmem:[%s1662_s29 + $0x968] sm:$0xff] }
  0xce   : > { %v440_v26 = vld [vmem:[%s1662_s29 + $0x970] sm:$0xff]  ;;  %1200 = vst [vmem:[%s1678_s16 + $0x930] sm:$0xff] %v816_v15  ;;  %1201 = vst [vmem:[%s1678_s16 + $0x938] sm:$0xff] %v817_v16  ;;  %v822_v27 = vmax.f32 %v438_v24, 0.0  ;;  %v823_v28 = vmax.f32 %v439_v25, 0.0  ;;  %v441_v30 = vld [vmem:[%s1662_s29 + $0x978] sm:$0xff] }
  0xcf   : > { %1202 = vst [vmem:[%s1678_s16 + $0x940] sm:$0xff] %v818_v17  ;;  %v824_v29 = vmax.f32 %v440_v26, 0.0  ;;  %v442_v31 = vld [vmem:[%s1662_s29 + $0x980] sm:$0xff]  ;;  %v443_v32 = vld [vmem:[%s1662_s29 + $0x988] sm:$0xff]  ;;  %1203 = vst [vmem:[%s1678_s16 + $0x948] sm:$0xff] %v819_v21  ;;  %v825_v33 = vmax.f32 %v441_v30, 0.0 }
  0xd0   : > { %1204 = vst [vmem:[%s1678_s16 + $0x950] sm:$0xff] %v820_v22  ;;  %1205 = vst [vmem:[%s1678_s16 + $0x958] sm:$0xff] %v821_v23  ;;  %v826_v34 = vmax.f32 %v442_v31, 0.0  ;;  %v827_v35 = vmax.f32 %v443_v32, 0.0  ;;  %v444_v36 = vld [vmem:[%s1662_s29 + $0x990] sm:$0xff]  ;;  %v445_v37 = vld [vmem:[%s1662_s29 + $0x998] sm:$0xff] }
  0xd1   : > { %v446_v38 = vld [vmem:[%s1662_s29 + $0x9a0] sm:$0xff]  ;;  %1206 = vst [vmem:[%s1678_s16 + $0x960] sm:$0xff] %v822_v27  ;;  %1207 = vst [vmem:[%s1678_s16 + $0x968] sm:$0xff] %v823_v28  ;;  %v828_v39 = vmax.f32 %v444_v36, 0.0  ;;  %v829_v40 = vmax.f32 %v445_v37, 0.0  ;;  %v447_v42 = vld [vmem:[%s1662_s29 + $0x9a8] sm:$0xff] }
  0xd2   : > { %1208 = vst [vmem:[%s1678_s16 + $0x970] sm:$0xff] %v824_v29  ;;  %v830_v41 = vmax.f32 %v446_v38, 0.0  ;;  %v448_v43 = vld [vmem:[%s1662_s29 + $0x9b0] sm:$0xff]  ;;  %v449_v44 = vld [vmem:[%s1662_s29 + $0x9b8] sm:$0xff]  ;;  %1209 = vst [vmem:[%s1678_s16 + $0x978] sm:$0xff] %v825_v33  ;;  %v831_v45 = vmax.f32 %v447_v42, 0.0 }
  0xd3   : > { %1210 = vst [vmem:[%s1678_s16 + $0x980] sm:$0xff] %v826_v34  ;;  %1211 = vst [vmem:[%s1678_s16 + $0x988] sm:$0xff] %v827_v35  ;;  %v832_v46 = vmax.f32 %v448_v43, 0.0  ;;  %v833_v47 = vmax.f32 %v449_v44, 0.0  ;;  %v450_v48 = vld [vmem:[%s1662_s29 + $0x9c0] sm:$0xff]  ;;  %v451_v49 = vld [vmem:[%s1662_s29 + $0x9c8] sm:$0xff] }
  0xd4   : > { %v452_v50 = vld [vmem:[%s1662_s29 + $0x9d0] sm:$0xff]  ;;  %1212 = vst [vmem:[%s1678_s16 + $0x990] sm:$0xff] %v828_v39  ;;  %1213 = vst [vmem:[%s1678_s16 + $0x998] sm:$0xff] %v829_v40  ;;  %v834_v51 = vmax.f32 %v450_v48, 0.0  ;;  %v835_v52 = vmax.f32 %v451_v49, 0.0  ;;  %v453_v54 = vld [vmem:[%s1662_s29 + $0x9d8] sm:$0xff] }
  0xd5   : > { %1214 = vst [vmem:[%s1678_s16 + $0x9a0] sm:$0xff] %v830_v41  ;;  %v836_v53 = vmax.f32 %v452_v50, 0.0  ;;  %v454_v55 = vld [vmem:[%s1662_s29 + $0x9e0] sm:$0xff]  ;;  %v455_v56 = vld [vmem:[%s1662_s29 + $0x9e8] sm:$0xff]  ;;  %1215 = vst [vmem:[%s1678_s16 + $0x9a8] sm:$0xff] %v831_v45  ;;  %v837_v57 = vmax.f32 %v453_v54, 0.0 }
  0xd6   : > { %1216 = vst [vmem:[%s1678_s16 + $0x9b0] sm:$0xff] %v832_v46  ;;  %1217 = vst [vmem:[%s1678_s16 + $0x9b8] sm:$0xff] %v833_v47  ;;  %v838_v58 = vmax.f32 %v454_v55, 0.0  ;;  %v839_v59 = vmax.f32 %v455_v56, 0.0  ;;  %v456_v60 = vld [vmem:[%s1662_s29 + $0x9f0] sm:$0xff]  ;;  %v457_v61 = vld [vmem:[%s1662_s29 + $0x9f8] sm:$0xff] }
  0xd7   : > { %v458_v62 = vld [vmem:[%s1662_s29 + $0xa00] sm:$0xff]  ;;  %1218 = vst [vmem:[%s1678_s16 + $0x9c0] sm:$0xff] %v834_v51  ;;  %1219 = vst [vmem:[%s1678_s16 + $0x9c8] sm:$0xff] %v835_v52  ;;  %v840_v63 = vmax.f32 %v456_v60, 0.0  ;;  %v841_v0 = vmax.f32 %v457_v61, 0.0  ;;  %v459_v2 = vld [vmem:[%s1662_s29 + $0xa08] sm:$0xff] }
  0xd8   : > { %1220 = vst [vmem:[%s1678_s16 + $0x9d0] sm:$0xff] %v836_v53  ;;  %v842_v1 = vmax.f32 %v458_v62, 0.0  ;;  %v460_v3 = vld [vmem:[%s1662_s29 + $0xa10] sm:$0xff]  ;;  %v461_v4 = vld [vmem:[%s1662_s29 + $0xa18] sm:$0xff]  ;;  %1221 = vst [vmem:[%s1678_s16 + $0x9d8] sm:$0xff] %v837_v57  ;;  %v843_v5 = vmax.f32 %v459_v2, 0.0 }
  0xd9   : > { %1222 = vst [vmem:[%s1678_s16 + $0x9e0] sm:$0xff] %v838_v58  ;;  %1223 = vst [vmem:[%s1678_s16 + $0x9e8] sm:$0xff] %v839_v59  ;;  %v844_v6 = vmax.f32 %v460_v3, 0.0  ;;  %v845_v7 = vmax.f32 %v461_v4, 0.0  ;;  %v462_v8 = vld [vmem:[%s1662_s29 + $0xa20] sm:$0xff]  ;;  %v463_v9 = vld [vmem:[%s1662_s29 + $0xa28] sm:$0xff] }
  0xda   : > { %v464_v10 = vld [vmem:[%s1662_s29 + $0xa30] sm:$0xff]  ;;  %1224 = vst [vmem:[%s1678_s16 + $0x9f0] sm:$0xff] %v840_v63  ;;  %1225 = vst [vmem:[%s1678_s16 + $0x9f8] sm:$0xff] %v841_v0  ;;  %v846_v11 = vmax.f32 %v462_v8, 0.0  ;;  %v847_v12 = vmax.f32 %v463_v9, 0.0  ;;  %v465_v14 = vld [vmem:[%s1662_s29 + $0xa38] sm:$0xff] }
  0xdb   : > { %1226 = vst [vmem:[%s1678_s16 + $0xa00] sm:$0xff] %v842_v1  ;;  %v848_v13 = vmax.f32 %v464_v10, 0.0  ;;  %v466_v15 = vld [vmem:[%s1662_s29 + $0xa40] sm:$0xff]  ;;  %v467_v16 = vld [vmem:[%s1662_s29 + $0xa48] sm:$0xff]  ;;  %1227 = vst [vmem:[%s1678_s16 + $0xa08] sm:$0xff] %v843_v5  ;;  %v849_v17 = vmax.f32 %v465_v14, 0.0 }
  0xdc   : > { %1228 = vst [vmem:[%s1678_s16 + $0xa10] sm:$0xff] %v844_v6  ;;  %1229 = vst [vmem:[%s1678_s16 + $0xa18] sm:$0xff] %v845_v7  ;;  %v850_v18 = vmax.f32 %v466_v15, 0.0  ;;  %v851_v19 = vmax.f32 %v467_v16, 0.0  ;;  %v468_v20 = vld [vmem:[%s1662_s29 + $0xa50] sm:$0xff]  ;;  %v469_v21 = vld [vmem:[%s1662_s29 + $0xa58] sm:$0xff] }
  0xdd   : > { %v470_v22 = vld [vmem:[%s1662_s29 + $0xa60] sm:$0xff]  ;;  %1230 = vst [vmem:[%s1678_s16 + $0xa20] sm:$0xff] %v846_v11  ;;  %1231 = vst [vmem:[%s1678_s16 + $0xa28] sm:$0xff] %v847_v12  ;;  %v852_v23 = vmax.f32 %v468_v20, 0.0  ;;  %v853_v24 = vmax.f32 %v469_v21, 0.0  ;;  %v471_v26 = vld [vmem:[%s1662_s29 + $0xa68] sm:$0xff] }
  0xde   : > { %1232 = vst [vmem:[%s1678_s16 + $0xa30] sm:$0xff] %v848_v13  ;;  %v854_v25 = vmax.f32 %v470_v22, 0.0  ;;  %v472_v27 = vld [vmem:[%s1662_s29 + $0xa70] sm:$0xff]  ;;  %v473_v28 = vld [vmem:[%s1662_s29 + $0xa78] sm:$0xff]  ;;  %1233 = vst [vmem:[%s1678_s16 + $0xa38] sm:$0xff] %v849_v17  ;;  %v855_v29 = vmax.f32 %v471_v26, 0.0 }
  0xdf   : > { %1234 = vst [vmem:[%s1678_s16 + $0xa40] sm:$0xff] %v850_v18  ;;  %1235 = vst [vmem:[%s1678_s16 + $0xa48] sm:$0xff] %v851_v19  ;;  %v856_v30 = vmax.f32 %v472_v27, 0.0  ;;  %v857_v31 = vmax.f32 %v473_v28, 0.0  ;;  %v474_v32 = vld [vmem:[%s1662_s29 + $0xa80] sm:$0xff]  ;;  %v475_v33 = vld [vmem:[%s1662_s29 + $0xa88] sm:$0xff] }
  0xe0   : > { %v476_v34 = vld [vmem:[%s1662_s29 + $0xa90] sm:$0xff]  ;;  %1236 = vst [vmem:[%s1678_s16 + $0xa50] sm:$0xff] %v852_v23  ;;  %1237 = vst [vmem:[%s1678_s16 + $0xa58] sm:$0xff] %v853_v24  ;;  %v858_v35 = vmax.f32 %v474_v32, 0.0  ;;  %v859_v36 = vmax.f32 %v475_v33, 0.0  ;;  %v477_v38 = vld [vmem:[%s1662_s29 + $0xa98] sm:$0xff] }
  0xe1   : > { %1238 = vst [vmem:[%s1678_s16 + $0xa60] sm:$0xff] %v854_v25  ;;  %v860_v37 = vmax.f32 %v476_v34, 0.0  ;;  %v478_v39 = vld [vmem:[%s1662_s29 + $0xaa0] sm:$0xff]  ;;  %v479_v40 = vld [vmem:[%s1662_s29 + $0xaa8] sm:$0xff]  ;;  %1239 = vst [vmem:[%s1678_s16 + $0xa68] sm:$0xff] %v855_v29  ;;  %v861_v41 = vmax.f32 %v477_v38, 0.0 }
  0xe2   : > { %1240 = vst [vmem:[%s1678_s16 + $0xa70] sm:$0xff] %v856_v30  ;;  %1241 = vst [vmem:[%s1678_s16 + $0xa78] sm:$0xff] %v857_v31  ;;  %v862_v42 = vmax.f32 %v478_v39, 0.0  ;;  %v863_v43 = vmax.f32 %v479_v40, 0.0  ;;  %v480_v44 = vld [vmem:[%s1662_s29 + $0xab0] sm:$0xff]  ;;  %v481_v45 = vld [vmem:[%s1662_s29 + $0xab8] sm:$0xff] }
  0xe3   : > { %v482_v46 = vld [vmem:[%s1662_s29 + $0xac0] sm:$0xff]  ;;  %1242 = vst [vmem:[%s1678_s16 + $0xa80] sm:$0xff] %v858_v35  ;;  %1243 = vst [vmem:[%s1678_s16 + $0xa88] sm:$0xff] %v859_v36  ;;  %v864_v47 = vmax.f32 %v480_v44, 0.0  ;;  %v865_v48 = vmax.f32 %v481_v45, 0.0  ;;  %v483_v50 = vld [vmem:[%s1662_s29 + $0xac8] sm:$0xff] }
  0xe4   : > { %1244 = vst [vmem:[%s1678_s16 + $0xa90] sm:$0xff] %v860_v37  ;;  %v866_v49 = vmax.f32 %v482_v46, 0.0  ;;  %v484_v51 = vld [vmem:[%s1662_s29 + $0xad0] sm:$0xff]  ;;  %v485_v52 = vld [vmem:[%s1662_s29 + $0xad8] sm:$0xff]  ;;  %1245 = vst [vmem:[%s1678_s16 + $0xa98] sm:$0xff] %v861_v41  ;;  %v867_v53 = vmax.f32 %v483_v50, 0.0 }
  0xe5   : > { %1246 = vst [vmem:[%s1678_s16 + $0xaa0] sm:$0xff] %v862_v42  ;;  %1247 = vst [vmem:[%s1678_s16 + $0xaa8] sm:$0xff] %v863_v43  ;;  %v868_v54 = vmax.f32 %v484_v51, 0.0  ;;  %v869_v55 = vmax.f32 %v485_v52, 0.0  ;;  %v486_v56 = vld [vmem:[%s1662_s29 + $0xae0] sm:$0xff]  ;;  %v487_v57 = vld [vmem:[%s1662_s29 + $0xae8] sm:$0xff] }
  0xe6   : > { %v488_v58 = vld [vmem:[%s1662_s29 + $0xaf0] sm:$0xff]  ;;  %1248 = vst [vmem:[%s1678_s16 + $0xab0] sm:$0xff] %v864_v47  ;;  %1249 = vst [vmem:[%s1678_s16 + $0xab8] sm:$0xff] %v865_v48  ;;  %v870_v59 = vmax.f32 %v486_v56, 0.0  ;;  %v871_v60 = vmax.f32 %v487_v57, 0.0  ;;  %v489_v62 = vld [vmem:[%s1662_s29 + $0xaf8] sm:$0xff] }
  0xe7   : > { %1250 = vst [vmem:[%s1678_s16 + $0xac0] sm:$0xff] %v866_v49  ;;  %v872_v61 = vmax.f32 %v488_v58, 0.0  ;;  %v490_v63 = vld [vmem:[%s1662_s29 + $0xb00] sm:$0xff]  ;;  %v491_v0 = vld [vmem:[%s1662_s29 + $0xb08] sm:$0xff]  ;;  %1251 = vst [vmem:[%s1678_s16 + $0xac8] sm:$0xff] %v867_v53  ;;  %v873_v1 = vmax.f32 %v489_v62, 0.0 }
  0xe8   : > { %1252 = vst [vmem:[%s1678_s16 + $0xad0] sm:$0xff] %v868_v54  ;;  %1253 = vst [vmem:[%s1678_s16 + $0xad8] sm:$0xff] %v869_v55  ;;  %v874_v2 = vmax.f32 %v490_v63, 0.0  ;;  %v875_v3 = vmax.f32 %v491_v0, 0.0  ;;  %v492_v4 = vld [vmem:[%s1662_s29 + $0xb10] sm:$0xff]  ;;  %v493_v5 = vld [vmem:[%s1662_s29 + $0xb18] sm:$0xff] }
  0xe9   : > { %v494_v6 = vld [vmem:[%s1662_s29 + $0xb20] sm:$0xff]  ;;  %1254 = vst [vmem:[%s1678_s16 + $0xae0] sm:$0xff] %v870_v59  ;;  %1255 = vst [vmem:[%s1678_s16 + $0xae8] sm:$0xff] %v871_v60  ;;  %v876_v7 = vmax.f32 %v492_v4, 0.0  ;;  %v877_v8 = vmax.f32 %v493_v5, 0.0  ;;  %v495_v10 = vld [vmem:[%s1662_s29 + $0xb28] sm:$0xff] }
  0xea   : > { %1256 = vst [vmem:[%s1678_s16 + $0xaf0] sm:$0xff] %v872_v61  ;;  %v878_v9 = vmax.f32 %v494_v6, 0.0  ;;  %v496_v11 = vld [vmem:[%s1662_s29 + $0xb30] sm:$0xff]  ;;  %v497_v12 = vld [vmem:[%s1662_s29 + $0xb38] sm:$0xff]  ;;  %1257 = vst [vmem:[%s1678_s16 + $0xaf8] sm:$0xff] %v873_v1  ;;  %v879_v13 = vmax.f32 %v495_v10, 0.0 }
  0xeb   : > { %1258 = vst [vmem:[%s1678_s16 + $0xb00] sm:$0xff] %v874_v2  ;;  %1259 = vst [vmem:[%s1678_s16 + $0xb08] sm:$0xff] %v875_v3  ;;  %v880_v14 = vmax.f32 %v496_v11, 0.0  ;;  %v881_v15 = vmax.f32 %v497_v12, 0.0  ;;  %v498_v16 = vld [vmem:[%s1662_s29 + $0xb40] sm:$0xff]  ;;  %v499_v17 = vld [vmem:[%s1662_s29 + $0xb48] sm:$0xff] }
  0xec   : > { %v500_v18 = vld [vmem:[%s1662_s29 + $0xb50] sm:$0xff]  ;;  %1260 = vst [vmem:[%s1678_s16 + $0xb10] sm:$0xff] %v876_v7  ;;  %1261 = vst [vmem:[%s1678_s16 + $0xb18] sm:$0xff] %v877_v8  ;;  %v882_v19 = vmax.f32 %v498_v16, 0.0  ;;  %v883_v20 = vmax.f32 %v499_v17, 0.0  ;;  %v501_v22 = vld [vmem:[%s1662_s29 + $0xb58] sm:$0xff] }
  0xed   : > { %1262 = vst [vmem:[%s1678_s16 + $0xb20] sm:$0xff] %v878_v9  ;;  %v884_v21 = vmax.f32 %v500_v18, 0.0  ;;  %v502_v23 = vld [vmem:[%s1662_s29 + $0xb60] sm:$0xff]  ;;  %v503_v24 = vld [vmem:[%s1662_s29 + $0xb68] sm:$0xff]  ;;  %1263 = vst [vmem:[%s1678_s16 + $0xb28] sm:$0xff] %v879_v13  ;;  %v885_v25 = vmax.f32 %v501_v22, 0.0 }
  0xee   : > { %1264 = vst [vmem:[%s1678_s16 + $0xb30] sm:$0xff] %v880_v14  ;;  %1265 = vst [vmem:[%s1678_s16 + $0xb38] sm:$0xff] %v881_v15  ;;  %v886_v26 = vmax.f32 %v502_v23, 0.0  ;;  %v887_v27 = vmax.f32 %v503_v24, 0.0  ;;  %v504_v28 = vld [vmem:[%s1662_s29 + $0xb70] sm:$0xff]  ;;  %v505_v29 = vld [vmem:[%s1662_s29 + $0xb78] sm:$0xff] }
  0xef   : > { %v506_v30 = vld [vmem:[%s1662_s29 + $0xb80] sm:$0xff]  ;;  %1266 = vst [vmem:[%s1678_s16 + $0xb40] sm:$0xff] %v882_v19  ;;  %1267 = vst [vmem:[%s1678_s16 + $0xb48] sm:$0xff] %v883_v20  ;;  %v888_v31 = vmax.f32 %v504_v28, 0.0  ;;  %v889_v32 = vmax.f32 %v505_v29, 0.0  ;;  %v507_v34 = vld [vmem:[%s1662_s29 + $0xb88] sm:$0xff] }
  0xf0   : > { %1268 = vst [vmem:[%s1678_s16 + $0xb50] sm:$0xff] %v884_v21  ;;  %v890_v33 = vmax.f32 %v506_v30, 0.0  ;;  %v508_v35 = vld [vmem:[%s1662_s29 + $0xb90] sm:$0xff]  ;;  %v509_v36 = vld [vmem:[%s1662_s29 + $0xb98] sm:$0xff]  ;;  %1269 = vst [vmem:[%s1678_s16 + $0xb58] sm:$0xff] %v885_v25  ;;  %v891_v37 = vmax.f32 %v507_v34, 0.0 }
  0xf1   : > { %1270 = vst [vmem:[%s1678_s16 + $0xb60] sm:$0xff] %v886_v26  ;;  %1271 = vst [vmem:[%s1678_s16 + $0xb68] sm:$0xff] %v887_v27  ;;  %v892_v38 = vmax.f32 %v508_v35, 0.0  ;;  %v893_v39 = vmax.f32 %v509_v36, 0.0  ;;  %v510_v40 = vld [vmem:[%s1662_s29 + $0xba0] sm:$0xff]  ;;  %v511_v41 = vld [vmem:[%s1662_s29 + $0xba8] sm:$0xff] }
  0xf2   : > { %v512_v42 = vld [vmem:[%s1662_s29 + $0xbb0] sm:$0xff]  ;;  %1272 = vst [vmem:[%s1678_s16 + $0xb70] sm:$0xff] %v888_v31  ;;  %1273 = vst [vmem:[%s1678_s16 + $0xb78] sm:$0xff] %v889_v32  ;;  %v894_v43 = vmax.f32 %v510_v40, 0.0  ;;  %v895_v44 = vmax.f32 %v511_v41, 0.0  ;;  %v513_v46 = vld [vmem:[%s1662_s29 + $0xbb8] sm:$0xff] }
  0xf3   : > { %1274 = vst [vmem:[%s1678_s16 + $0xb80] sm:$0xff] %v890_v33  ;;  %v896_v45 = vmax.f32 %v512_v42, 0.0  ;;  %v514_v47 = vld [vmem:[%s1662_s29 + $0xbc0] sm:$0xff]  ;;  %v515_v48 = vld [vmem:[%s1662_s29 + $0xbc8] sm:$0xff]  ;;  %1275 = vst [vmem:[%s1678_s16 + $0xb88] sm:$0xff] %v891_v37  ;;  %v897_v49 = vmax.f32 %v513_v46, 0.0 }
  0xf4   : > { %1276 = vst [vmem:[%s1678_s16 + $0xb90] sm:$0xff] %v892_v38  ;;  %1277 = vst [vmem:[%s1678_s16 + $0xb98] sm:$0xff] %v893_v39  ;;  %v898_v50 = vmax.f32 %v514_v47, 0.0  ;;  %v899_v51 = vmax.f32 %v515_v48, 0.0  ;;  %v516_v52 = vld [vmem:[%s1662_s29 + $0xbd0] sm:$0xff]  ;;  %v517_v53 = vld [vmem:[%s1662_s29 + $0xbd8] sm:$0xff] }
  0xf5   : > { %v518_v54 = vld [vmem:[%s1662_s29 + $0xbe0] sm:$0xff]  ;;  %1278 = vst [vmem:[%s1678_s16 + $0xba0] sm:$0xff] %v894_v43  ;;  %1279 = vst [vmem:[%s1678_s16 + $0xba8] sm:$0xff] %v895_v44  ;;  %v900_v55 = vmax.f32 %v516_v52, 0.0  ;;  %v901_v56 = vmax.f32 %v517_v53, 0.0  ;;  %v519_v58 = vld [vmem:[%s1662_s29 + $0xbe8] sm:$0xff] }
  0xf6   : > { %1280 = vst [vmem:[%s1678_s16 + $0xbb0] sm:$0xff] %v896_v45  ;;  %v902_v57 = vmax.f32 %v518_v54, 0.0  ;;  %v520_v59 = vld [vmem:[%s1662_s29 + $0xbf0] sm:$0xff]  ;;  %v521_v60 = vld [vmem:[%s1662_s29 + $0xbf8] sm:$0xff]  ;;  %1281 = vst [vmem:[%s1678_s16 + $0xbb8] sm:$0xff] %v897_v49  ;;  %v903_v61 = vmax.f32 %v519_v58, 0.0 }
  0xf7   : > { %1282 = vst [vmem:[%s1678_s16 + $0xbc0] sm:$0xff] %v898_v50  ;;  %1283 = vst [vmem:[%s1678_s16 + $0xbc8] sm:$0xff] %v899_v51  ;;  %v904_v62 = vmax.f32 %v520_v59, 0.0  ;;  %v905_v63 = vmax.f32 %v521_v60, 0.0  ;;  %s1291_s10 = scalar_lea.sflag [#allocation4], %s1658_s22  ;;  %s1476_s2 = scalar_lea.vmem %s2444_s30, 49152 }
  0xf8   : > { %1284 = vst [vmem:[%s1678_s16 + $0xbd0] sm:$0xff] %v900_v55  ;;  %1285 = vst [vmem:[%s1678_s16 + $0xbd8] sm:$0xff] %v901_v56  ;;  %p1477_p6 = scmp.ne.s32.totalorder %s2444_s30, %s1476_s2  ;;  %p2498_p11 = scmp.ne.s32.totalorder %s2495_s17, 0 }
  0xf9   : > { %1286 = vst [vmem:[%s1678_s16 + $0xbe0] sm:$0xff] %v902_v57  ;;  %1287 = vst [vmem:[%s1678_s16 + $0xbe8] sm:$0xff] %v903_v61  ;;  %s1547_s3 = smov [#allocation5]  }
  0xfa   : > { %1288 = vst [vmem:[%s1678_s16 + $0xbf0] sm:$0xff] %v904_v62  ;;  %1289 = vst [vmem:[%s1678_s16 + $0xbf8] sm:$0xff] %v905_v63  ;;  %p1478_p12 = pnand %p1477_p6, %p2498_p11  ;;  %s1480_s4 = sshll.u32 %s1547_s3, 4  ;;  %s1481_s4 = int_to_ptr.vmem [resolvable:$false] %s1480_s4 }
  0xfb   : > { %s1482_s5 = scalar_lea.vmem %s1481_s4, 98304  ;;  %p1483_p8 = scmp.lt.s32.totalorder %s2444_s30, %s1481_s4 }
  0xfc   : > { %p1479_p13 = pneg %p1478_p12  ;;  %p1484_p10 = scmp.lt.s32.totalorder %s1482_s5, %s1476_s2 }
  0xfe   : > { %p1485_p0 = por %p1484_p10, %p1483_p8 }
 0x100   : > { %p1486_p2 = pnand %p1485_p0, %p1479_p13 }
 0x102   : > { %1489 = shalt.err (!%p1486_p2)
}
 0x103   : > { %s1490_s11 = scalar_lea.hbm %s2435_s28, 49152  ;;  %s1494_s19 = scalar_lea.hbm %s2492_s1, 98304 }
 0x104   : > { %p1491_p4 = scmp.ne.s32.totalorder %s2435_s28, %s1490_s11  ;;  %p1495_p9 = scmp.lt.u32.totalorder %s2435_s28, %s2492_s1 }
 0x105   : > { %p1496_p1 = scmp.lt.u32.totalorder %s1494_s19, %s1490_s11  ;;  %p1498_p6 = scmp.lt.u32.totalorder %s1490_s11, %s2435_s28 }
 0x106   : > { %p1492_p5 = pnand %p1491_p4, %p2498_p11 }
 0x107   : > { %p1497_p3 = por %p1496_p1, %p1495_p9 }
 0x108   : > { %p1493_p7 = pneg %p1492_p5 }
 0x109   : > { %p1499_p12 = por %p1498_p6, %p1497_p3 }
 0x10b   : > { %p1500_p13 = pnand %p1499_p12, %p1493_p7 }
 0x10d   : > { %1503 = shalt.err (!%p1500_p13)
}
 0x10e   : > { %s1548_s23 = smov 1024   ;;  %s1549_s26 = smov 64  }
 0x10f   : > { %1398 = dma.vmem_to_hbm [thread:$0]  (%p2498_p11), %s2444_s30, 49152, %s2435_s28, %s1291_s10, %s1548_s23, %s1548_s23, %s1549_s26  }
 0x110 PF: > { %s1320_s29 = sand.u32 1, %s1530_s6   ;;  %p2499_p8 = scmp.ne.s32.totalorder %s2496_s18, 0 }
 0x111   : > { %p2500_p10 = scmp.ge.s32.totalorder %s1542_s9, 2  ;;  %s1321_s24 = scalar_lea.sflag [#allocation4], %s1320_s29 }
 0x113   : > { %p1405_p0 = pnand %p2500_p10, %p2499_p8 }
 0x115   : > { %1525 = dma.done.wait (!%p1405_p0), %s1321_s24, 49152  }
 0x116   : > { %1527 = vsyncadd (!%p1405_p0), %s1321_s24, 4294918144  ;;  %p14_p2 = scmp.ge.s32.totalorder %s1585_s12, 4   ;;  %s2501_s6 = smov %s1534_s7 }
 0x117   : > { %s2502_s7 = smov %s1538_s8  ;;  %s2503_s8 = smov %s1597_s15 }
 0x118   : > { %s2504_s9 = smov %s1585_s12  ;;  %16 = sbr.rel (!%p14_p2) target bundleno = 5 (0x5), region = 69 }
 0x11f   :  { %1326 = vsyncpa [#allocation3], 1 }
 0x120   :  { %1328 = vsyncpa [#allocation3 + $0x1], 1 }
 0x121   :  { %1329 = vsyncpa [#allocation4], 1 }
 0x122   :  { %1331 = vsyncpa [#allocation4 + $0x1], 1 }

</bundles_post_ra>
